<compile_context>
chip_gen: v6e
topology: v6e:2x2x1
jax: 0.10.0
libtpu: 0.0.40
codegen_flags: <defaults>
</compile_context>

<pallas_src>
import functools

import jax
import jax.numpy as jnp
from jax.experimental import pallas as pl
from jax.experimental.pallas import tpu as pltpu

MATMUL_DTYPE = jnp.bfloat16   # MXU operand dtype (accumulation is always f32)
ACT_DTYPE = jnp.bfloat16      # streamed inter-layer (S, B, Hp) activations


def _round_up(x, m):
    return pl.cdiv(x, m) * m


# -----------------------------------------------------------------------------
# Tiled matmul + bias kernel (used for input projections and the final Linear)
# -----------------------------------------------------------------------------
def matmul_bias_kernel(x_ref, w_ref, b_ref, o_ref, acc_ref):
    k = pl.program_id(2)

    @pl.when(k == 0)
    def _():
        acc_ref[...] = jnp.zeros_like(acc_ref)

    acc_ref[...] += jnp.dot(x_ref[...], w_ref[...],
                            preferred_element_type=jnp.float32)

    @pl.when(k == pl.num_programs(2) - 1)
    def _():
        o_ref[...] = (acc_ref[...] + b_ref[...]).astype(o_ref.dtype)


def matmul_bias(x, w, b, *, out_dtype=jnp.float32, tm=512, tn=256, tk=512):
    """(M, K) @ (K, N) + (1, N) -> (M, N), tiled for the MXU, bf16 operands."""
    M, K = x.shape
    K2, N = w.shape
    assert K == K2
    tm = min(tm, _round_up(M, 8))
    tn = min(tn, _round_up(N, 128))
    tk = min(tk, _round_up(K, 128))
    Mp, Kp, Np = _round_up(M, tm), _round_up(K, tk), _round_up(N, tn)

    xp = jnp.pad(x.astype(MATMUL_DTYPE), ((0, Mp - M), (0, Kp - K)))
    wp = jnp.pad(w.astype(MATMUL_DTYPE), ((0, Kp - K), (0, Np - N)))
    bp = jnp.pad(b.reshape(1, -1).astype(jnp.float32), ((0, 0), (0, Np - N)))

    out = pl.pallas_call(
        matmul_bias_kernel,
        out_shape=jax.ShapeDtypeStruct((Mp, Np), out_dtype),
        grid_spec=pltpu.PrefetchScalarGridSpec(
            num_scalar_prefetch=0,
            grid=(Mp // tm, Np // tn, Kp // tk),
            in_specs=[
                pl.BlockSpec((tm, tk), lambda i, j, k: (i, k)),
                pl.BlockSpec((tk, tn), lambda i, j, k: (k, j)),
                pl.BlockSpec((1, tn), lambda i, j, k: (0, j)),
            ],
            out_specs=pl.BlockSpec((tm, tn), lambda i, j, k: (i, j)),
            scratch_shapes=[pltpu.VMEM((tm, tn), jnp.float32)],
        ),
        compiler_params=pltpu.CompilerParams(
            dimension_semantics=("parallel", "parallel", "arbitrary")),
        # TODO(synk): for large H/V configs raise vmem_limit_bytes (v6e has
        # 128 MiB physical vs 32 MiB scoped default) and sweep bigger tiles.
    )(xp, wp, bp)
    return out[:M, :N]


# -----------------------------------------------------------------------------
# LSTM recurrence kernel (input projection already hoisted into x_proj)
# -----------------------------------------------------------------------------
def lstm_seq_kernel(xproj_ref, whh_ref, out_ref, hn_ref, cn_ref, h_sc, c_sc,
                    *, t_chunk, seq_len, mask_tail):
    """gates = x_proj[t] + h @ W_hh^T, chunked T_CHUNK timesteps per grid step.

    grid=(S_pad // t_chunk,), sequential ("arbitrary"); h/c live in f32 VMEM
    scratch across grid steps. Gate layout = 4 lane-aligned slabs of width Hp.
    """
    chunk = pl.program_id(0)
    hp = h_sc.shape[-1]

    @pl.when(chunk == 0)
    def _():
        h_sc[...] = jnp.zeros_like(h_sc)
        c_sc[...] = jnp.zeros_like(c_sc)

    whh = whh_ref[...]          # (Hp, 4*Hp) bf16, hoisted out of the time loop

    def step(tt, carry):
        h_prev = h_sc[...]
        c_prev = c_sc[...]
        gates = xproj_ref[tt].astype(jnp.float32) + jnp.dot(
            h_prev.astype(whh.dtype), whh, preferred_element_type=jnp.float32)
        i = jax.nn.sigmoid(gates[:, 0 * hp:1 * hp])
        f = jax.nn.sigmoid(gates[:, 1 * hp:2 * hp])
        g = jnp.tanh(gates[:, 2 * hp:3 * hp])
        o = jax.nn.sigmoid(gates[:, 3 * hp:4 * hp])
        c_new = f * c_prev + i * g
        h_new = o * jnp.tanh(c_new)
        if mask_tail:
            # S was padded to a multiple of t_chunk: freeze the state on the
            # padded tail steps (scalar f32 mask -> plain VPU arithmetic).
            valid = ((chunk * t_chunk + tt) < seq_len).astype(jnp.float32)
            h_new = valid * h_new + (1.0 - valid) * h_prev
            c_new = valid * c_new + (1.0 - valid) * c_prev
        h_sc[...] = h_new
        c_sc[...] = c_new
        out_ref[tt] = h_new.astype(out_ref.dtype)
        return carry

    jax.lax.fori_loop(0, t_chunk, step, 0, unroll=True)

    @pl.when(chunk == pl.num_programs(0) - 1)
    def _():
        hn_ref[...] = h_sc[...]
        cn_ref[...] = c_sc[...]


def lstm_layer(x_proj, w_hh_t, *, seq_len, t_chunk):
    S_pad, B, G = x_proj.shape
    Hp = G // 4
    kernel = functools.partial(
        lstm_seq_kernel, t_chunk=t_chunk, seq_len=seq_len,
        mask_tail=(S_pad != seq_len))
    out_shapes = (
        jax.ShapeDtypeStruct((S_pad, B, Hp), ACT_DTYPE),   # per-step hidden
        jax.ShapeDtypeStruct((B, Hp), jnp.float32),        # h_N
        jax.ShapeDtypeStruct((B, Hp), jnp.float32),        # c_N
    )
    return pl.pallas_call(
        kernel,
        out_shape=out_shapes,
        grid_spec=pltpu.PrefetchScalarGridSpec(
            num_scalar_prefetch=0,
            grid=(S_pad // t_chunk,),
            in_specs=[
                pl.BlockSpec((t_chunk, B, G), lambda c: (c, 0, 0)),
                # Grid-invariant resident weights (constant index_map).
                # TODO(synk): on v7x single-buffer this block (pl.Buffered(1))
                # and add a leading "parallel" batch-block axis for 2 TCs.
                pl.BlockSpec((Hp, G), lambda c: (0, 0)),
            ],
            out_specs=[
                pl.BlockSpec((t_chunk, B, Hp), lambda c: (c, 0, 0)),
                pl.BlockSpec((B, Hp), lambda c: (0, 0)),
                pl.BlockSpec((B, Hp), lambda c: (0, 0)),
            ],
            scratch_shapes=[
                pltpu.VMEM((B, Hp), jnp.float32),
                pltpu.VMEM((B, Hp), jnp.float32),
            ],
        ),
        compiler_params=pltpu.CompilerParams(
            dimension_semantics=("arbitrary",)),
    )(x_proj, w_hh_t.astype(MATMUL_DTYPE))


# -----------------------------------------------------------------------------
# Weight repacking: transpose + pad each gate slab from H to Hp (lane aligned)
# -----------------------------------------------------------------------------
def _gate_pack_w(w, hidden_pad):
    # w: (4H, In) PyTorch layout (i,f,g,o row blocks) -> (In, 4*Hp)
    four_h, in_dim = w.shape
    h = four_h // 4
    w4 = jnp.transpose(w.reshape(4, h, in_dim), (2, 0, 1))   # (in, gate, out)
    w4 = jnp.pad(w4, ((0, 0), (0, 0), (0, hidden_pad - h)))
    return w4.reshape(in_dim, 4 * hidden_pad)


def _gate_pack_b(b_ih, b_hh, hidden_pad):
    b = (b_ih + b_hh).reshape(4, -1)
    h = b.shape[1]
    return jnp.pad(b, ((0, 0), (0, hidden_pad - h))).reshape(1, 4 * hidden_pad)


# -----------------------------------------------------------------------------
# Forward pass (matches PoetryLSTM.forward with hidden=None)
# -----------------------------------------------------------------------------
@functools.partial(jax.jit, static_argnames=("num_layers",))
def poetry_lstm_forward(params, x_tokens, num_layers):
    # TODO(synk): support caller-provided initial hidden state (hidden != None).
    emb = jnp.take(params["embedding"], x_tokens, axis=0)     # (B, S, E) gather glue
    B, S, E = emb.shape
    H = params["w_hh"][0].shape[-1]
    Hp = _round_up(H, 128)                                    # lane-aligned hidden
    t_chunk = min(8, S)
    S_pad = _round_up(S, t_chunk)

    layer_in = jnp.transpose(emb, (1, 0, 2))                  # (S, B, E) time-major
    if S_pad != S:
        layer_in = jnp.pad(layer_in, ((0, S_pad - S), (0, 0), (0, 0)))

    h_finals, c_finals = [], []
    out_seq = layer_in
    for l in range(num_layers):
        in_dim = layer_in.shape[-1]
        w_ih_t = _gate_pack_w(params["w_ih"][l], Hp)          # (in, 4*Hp)
        if w_ih_t.shape[0] < in_dim:                          # layers > 0: H -> Hp rows
            w_ih_t = jnp.pad(w_ih_t, ((0, in_dim - w_ih_t.shape[0]), (0, 0)))
        bias = _gate_pack_b(params["b_ih"][l], params["b_hh"][l], Hp)
        w_hh_t = jnp.pad(_gate_pack_w(params["w_hh"][l], Hp), ((0, Hp - H), (0, 0)))

        # (1) hoisted input projection: one big batched MXU matmul (bias baked in)
        x_proj = matmul_bias(layer_in.reshape(S_pad * B, in_dim), w_ih_t, bias)
        x_proj = x_proj.reshape(S_pad, B, 4 * Hp)

        # (2) serial recurrence, T_CHUNK timesteps per grid step
        out_seq, h_n, c_n = lstm_layer(x_proj, w_hh_t, seq_len=S, t_chunk=t_chunk)
        layer_in = out_seq
        h_finals.append(h_n[:, :H])
        c_finals.append(c_n[:, :H])

    # (3) tiled Linear (B*S, Hp) @ (Hp, V); padded h lanes hit zero weight rows.
    out = jnp.transpose(out_seq, (1, 0, 2))[:, :S, :].reshape(B * S, Hp)
    fc_w_t = jnp.pad(jnp.transpose(params["fc_w"]), ((0, Hp - H), (0, 0)))
    logits = matmul_bias(out, fc_w_t, params["fc_b"].reshape(1, -1))
    return logits, (jnp.stack(h_finals, 0), jnp.stack(c_finals, 0))


# -----------------------------------------------------------------------------
# Pure-JAX reference (PyTorch LSTM semantics) for verification
# -----------------------------------------------------------------------------
def ref_forward(params, x_tokens, num_layers):
    emb = params["embedding"][x_tokens]
    B, S, _ = emb.shape
    H = params["w_hh"][0].shape[-1]
    layer_in = emb
    hs, cs = [], []
    for l in range(num_layers):
        w_ih, w_hh = params["w_ih"][l], params["w_hh"][l]
        b = params["b_ih"][l] + params["b_hh"][l]
        h = jnp.zeros((B, H), jnp.float32)
        c = jnp.zeros((B, H), jnp.float32)
        outs = []
        for t in range(S):
            g = layer_in[:, t] @ w_ih.T + h @ w_hh.T + b
            i = jax.nn.sigmoid(g[:, 0 * H:1 * H])
            f = jax.nn.sigmoid(g[:, 1 * H:2 * H])
            gg = jnp.tanh(g[:, 2 * H:3 * H])
            o = jax.nn.sigmoid(g[:, 3 * H:4 * H])
            c = f * c + i * gg
            h = o * jnp.tanh(c)
            outs.append(h)
        layer_in = jnp.stack(outs, axis=1)
        hs.append(h)
        cs.append(c)
    out = layer_in.reshape(-1, H) @ params["fc_w"].T + params["fc_b"]
    return out, (jnp.stack(hs, 0), jnp.stack(cs, 0))


# -----------------------------------------------------------------------------
# Deterministic parameter init (PyTorch shapes)
# -----------------------------------------------------------------------------
def init_params(key, vocab_size, embed_size, hidden_size, num_layers):
    ks = jax.random.split(key, 3 + 4 * num_layers)
    k = 1.0 / jnp.sqrt(hidden_size)
    params = {
        "embedding": jax.random.normal(ks[0], (vocab_size, embed_size), jnp.float32),
        "fc_w": jax.random.uniform(ks[1], (vocab_size, hidden_size), jnp.float32, -k, k),
        "fc_b": jax.random.uniform(ks[2], (vocab_size,), jnp.float32, -k, k),
        "w_ih": [], "w_hh": [], "b_ih": [], "b_hh": [],
    }
    for l in range(num_layers):
        in_size = embed_size if l == 0 else hidden_size
        kk = ks[3 + 4 * l: 3 + 4 * (l + 1)]
        params["w_ih"].append(
            jax.random.uniform(kk[0], (4 * hidden_size, in_size), jnp.float32, -k, k))
        params["w_hh"].append(
            jax.random.uniform(kk[1], (4 * hidden_size, hidden_size), jnp.float32, -k, k))
        params["b_ih"].append(
            jax.random.uniform(kk[2], (4 * hidden_size,), jnp.float32, -k, k))
        params["b_hh"].append(
            jax.random.uniform(kk[3], (4 * hidden_size,), jnp.float32, -k, k))
    return params


def _run_and_check(vocab_size, embed_size, hidden_size, num_layers, B, S):
    key = jax.random.PRNGKey(0)
    pkey, xkey = jax.random.split(key)
    params = init_params(pkey, vocab_size, embed_size, hidden_size, num_layers)
    x_tokens = jax.random.randint(xkey, (B, S), 0, vocab_size, dtype=jnp.int32)

    logits, (h_n, c_n) = poetry_lstm_forward(params, x_tokens, num_layers)
    jax.block_until_ready((logits, h_n, c_n))

    ref_logits, (ref_h, ref_c) = ref_forward(params, x_tokens, num_layers)
    assert logits.shape == (B * S, vocab_size)
    assert h_n.shape == (num_layers, B, hidden_size)
    assert c_n.shape == (num_layers, B, hidden_size)
    # bf16 MXU operands (f32 accumulation) -> relaxed tolerance vs f32 reference.
    assert jnp.allclose(logits, ref_logits, atol=5e-2, rtol=5e-2), \
        float(jnp.max(jnp.abs(logits - ref_logits)))
    assert jnp.allclose(h_n, ref_h, atol=5e-2, rtol=5e-2)
    assert jnp.allclose(c_n, ref_c, atol=5e-2, rtol=5e-2)


if __name__ == "__main__":
    # Small shapes consistent with the module.
    _run_and_check(vocab_size=32, embed_size=16, hidden_size=32,
                   num_layers=2, B=2, S=8)
    # Odd shapes: exercises H -> 128-lane padding and S not divisible by T_CHUNK.
    _run_and_check(vocab_size=50, embed_size=24, hidden_size=40,
                   num_layers=1, B=3, S=11)
    print("KERNEL_OK")
</pallas_src>

<mosaic_0001>
module attributes {stable_mosaic.version = 11 : i64} {
  func.func @matmul_bias_kernel(%arg0: i32, %arg1: i32, %arg2: i32, %arg3: memref<16x128xbf16, #tpu.memory_space<vmem>>, %arg4: memref<128x256xbf16, #tpu.memory_space<vmem>>, %arg5: memref<1x256xf32, #tpu.memory_space<vmem>>, %arg6: memref<16x256xf32, #tpu.memory_space<vmem>>, %arg7: memref<16x256xf32, #tpu.memory_space<vmem>>) attributes {dimension_semantics = [#tpu.dimension_semantics<parallel>, #tpu.dimension_semantics<parallel>, #tpu.dimension_semantics<arbitrary>], iteration_bounds = array<i64: 1, 2, 1>, scalar_prefetch = 0 : i64, scratch_operands = 1 : i64, tpu.core_type = #tpu.core_type<tc>, window_params = [{transform_indices = @transform_0, window_bounds = array<i64: 16, 128>}, {transform_indices = @transform_1, window_bounds = array<i64: 128, 256>}, {transform_indices = @transform_2, window_bounds = array<i64: 1, 256>}, {transform_indices = @transform_3, window_bounds = array<i64: 16, 256>}]} {
    %c0_i32 = arith.constant 0 : i32
    %0 = arith.cmpi eq, %arg2, %c0_i32 : i32
    %1 = arith.extui %0 : i1 to i32
    %c0_i32_0 = arith.constant 0 : i32
    %2 = arith.cmpi ne, %1, %c0_i32_0 : i32
    scf.if %2 {
      %cst_10 = arith.constant 0.000000e+00 : f32
      %12 = vector.broadcast %cst_10 : f32 to vector<16x256xf32>
      %c0_11 = arith.constant 0 : index
      %c0_12 = arith.constant 0 : index
      %13 = vector.load %arg7[%c0_11, %c0_12] : memref<16x256xf32, #tpu.memory_space<vmem>>, vector<16x256xf32>
      tpu.vector_store %arg7[%c0_11, %c0_12], %12 {strides = array<i32>} : memref<16x256xf32, #tpu.memory_space<vmem>>, vector<16x256xf32>,
    } else {
    }
    %c0 = arith.constant 0 : index
    %c0_1 = arith.constant 0 : index
    %3 = vector.load %arg7[%c0, %c0_1] : memref<16x256xf32, #tpu.memory_space<vmem>>, vector<16x256xf32>
    %c0_2 = arith.constant 0 : index
    %c0_3 = arith.constant 0 : index
    %4 = vector.load %arg3[%c0_2, %c0_3] : memref<16x128xbf16, #tpu.memory_space<vmem>>, vector<16x128xbf16>
    %c0_4 = arith.constant 0 : index
    %c0_5 = arith.constant 0 : index
    %5 = vector.load %arg4[%c0_4, %c0_5] : memref<128x256xbf16, #tpu.memory_space<vmem>>, vector<128x256xbf16>
    %cst = arith.constant dense<0.000000e+00> : vector<16x256xf32>
    %6 = tpu.matmul %4, %5, %cst {dimension_numbers = #tpu.dot_dimension_numbers<[1], [0], [0], [1], [0, 0, 1, 1], [], []>} : vector<16x128xbf16>, vector<128x256xbf16>, vector<16x256xf32> -> vector<16x256xf32>
    %7 = arith.addf %3, %6 : vector<16x256xf32>
    %c0_6 = arith.constant 0 : index
    %c0_7 = arith.constant 0 : index
    %8 = vector.load %arg7[%c0_6, %c0_7] : memref<16x256xf32, #tpu.memory_space<vmem>>, vector<16x256xf32>
    tpu.vector_store %arg7[%c0_6, %c0_7], %7 {strides = array<i32>} : memref<16x256xf32, #tpu.memory_space<vmem>>, vector<16x256xf32>,
    %c0_i32_8 = arith.constant 0 : i32
    %9 = arith.cmpi eq, %arg2, %c0_i32_8 : i32
    %10 = arith.extui %9 : i1 to i32
    %c0_i32_9 = arith.constant 0 : i32
    %11 = arith.cmpi ne, %10, %c0_i32_9 : i32
    scf.if %11 {
      %c0_10 = arith.constant 0 : index
      %c0_11 = arith.constant 0 : index
      %12 = vector.load %arg7[%c0_10, %c0_11] : memref<16x256xf32, #tpu.memory_space<vmem>>, vector<16x256xf32>
      %c0_12 = arith.constant 0 : index
      %c0_13 = arith.constant 0 : index
      %13 = vector.load %arg5[%c0_12, %c0_13] : memref<1x256xf32, #tpu.memory_space<vmem>>, vector<1x256xf32>
      %14 = vector.broadcast %13 : vector<1x256xf32> to vector<16x256xf32>
      %15 = arith.addf %12, %14 : vector<16x256xf32>
      %c0_14 = arith.constant 0 : index
      %c0_15 = arith.constant 0 : index
      %16 = vector.load %arg6[%c0_14, %c0_15] : memref<16x256xf32, #tpu.memory_space<vmem>>, vector<16x256xf32>
      tpu.vector_store %arg6[%c0_14, %c0_15], %15 {strides = array<i32>} : memref<16x256xf32, #tpu.memory_space<vmem>>, vector<16x256xf32>,
    } else {
    }
    return
  }
  func.func @transform_0(%arg0: i32, %arg1: i32, %arg2: i32) -> (i32, i32) {
    %c0_i32 = arith.constant 0 : i32
    return %arg0, %arg2 : i32, i32
  }
  func.func @transform_1(%arg0: i32, %arg1: i32, %arg2: i32) -> (i32, i32) {
    %c0_i32 = arith.constant 0 : i32
    return %arg2, %arg1 : i32, i32
  }
  func.func @transform_2(%arg0: i32, %arg1: i32, %arg2: i32) -> (i32, i32) {
    %c0_i32 = arith.constant 0 : i32
    %c0_i32_0 = arith.constant 0 : i32
    return %c0_i32, %arg1 : i32, i32
  }
  func.func @transform_3(%arg0: i32, %arg1: i32, %arg2: i32) -> (i32, i32) {
    %c0_i32 = arith.constant 0 : i32
    return %arg0, %arg1 : i32, i32
  }
}

module attributes {stable_mosaic.version = 11 : i64} {
  func.func @lstm_seq_kernel(%arg0: i32, %arg1: memref<8x2x512xf32, #tpu.memory_space<vmem>>, %arg2: memref<128x512xbf16, #tpu.memory_space<vmem>>, %arg3: memref<8x2x128xbf16, #tpu.memory_space<vmem>>, %arg4: memref<2x128xf32, #tpu.memory_space<vmem>>, %arg5: memref<2x128xf32, #tpu.memory_space<vmem>>, %arg6: memref<2x128xf32, #tpu.memory_space<vmem>>, %arg7: memref<2x128xf32, #tpu.memory_space<vmem>>) attributes {dimension_semantics = [#tpu.dimension_semantics<arbitrary>], iteration_bounds = array<i64: 1>, scalar_prefetch = 0 : i64, scratch_operands = 2 : i64, tpu.core_type = #tpu.core_type<tc>, window_params = [{transform_indices = @transform_0, window_bounds = array<i64: 8, 2, 512>}, {pipeline_mode = #tpu.pipeline_mode<synchronous>, transform_indices = @transform_1, window_bounds = array<i64: 128, 512>}, {transform_indices = @transform_2, window_bounds = array<i64: 8, 2, 128>}, {pipeline_mode = #tpu.pipeline_mode<synchronous>, transform_indices = @transform_3, window_bounds = array<i64: 2, 128>}, {pipeline_mode = #tpu.pipeline_mode<synchronous>, transform_indices = @transform_4, window_bounds = array<i64: 2, 128>}]} {
    %c0_i32 = arith.constant 0 : i32
    %0 = arith.cmpi eq, %arg0, %c0_i32 : i32
    %1 = arith.extui %0 : i1 to i32
    %c0_i32_0 = arith.constant 0 : i32
    %2 = arith.cmpi ne, %1, %c0_i32_0 : i32
    scf.if %2 {
      %cst_132 = arith.constant 0.000000e+00 : f32
      %327 = vector.broadcast %cst_132 : f32 to vector<2x128xf32>
      %c0_133 = arith.constant 0 : index
      %c0_134 = arith.constant 0 : index
      %328 = vector.load %arg6[%c0_133, %c0_134] : memref<2x128xf32, #tpu.memory_space<vmem>>, vector<2x128xf32>
      tpu.vector_store %arg6[%c0_133, %c0_134], %327 {strides = array<i32>} : memref<2x128xf32, #tpu.memory_space<vmem>>, vector<2x128xf32>,
      %cst_135 = arith.constant 0.000000e+00 : f32
      %329 = vector.broadcast %cst_135 : f32 to vector<2x128xf32>
      %c0_136 = arith.constant 0 : index
      %c0_137 = arith.constant 0 : index
      %330 = vector.load %arg7[%c0_136, %c0_137] : memref<2x128xf32, #tpu.memory_space<vmem>>, vector<2x128xf32>
      tpu.vector_store %arg7[%c0_136, %c0_137], %329 {strides = array<i32>} : memref<2x128xf32, #tpu.memory_space<vmem>>, vector<2x128xf32>,
    } else {
    }
    %c0 = arith.constant 0 : index
    %c0_1 = arith.constant 0 : index
    %3 = vector.load %arg2[%c0, %c0_1] : memref<128x512xbf16, #tpu.memory_space<vmem>>, vector<128x512xbf16>
    %c0_i32_2 = arith.constant 0 : i32
    %c0_3 = arith.constant 0 : index
    %c0_4 = arith.constant 0 : index
    %4 = vector.load %arg6[%c0_3, %c0_4] : memref<2x128xf32, #tpu.memory_space<vmem>>, vector<2x128xf32>
    %c0_5 = arith.constant 0 : index
    %c0_6 = arith.constant 0 : index
    %5 = vector.load %arg7[%c0_5, %c0_6] : memref<2x128xf32, #tpu.memory_space<vmem>>, vector<2x128xf32>
    %6 = arith.index_cast %c0_i32_2 : i32 to index
    %c0_7 = arith.constant 0 : index
    %c0_8 = arith.constant 0 : index
    %7 = vector.load %arg1[%6, %c0_7, %c0_8] : memref<8x2x512xf32, #tpu.memory_space<vmem>>, vector<1x2x512xf32>
    %8 = vector.shape_cast %7 : vector<1x2x512xf32> to vector<2x512xf32>
    %9 = arith.truncf %4 : vector<2x128xf32> to vector<2x128xbf16>
    %cst = arith.constant dense<0.000000e+00> : vector<2x512xf32>
    %10 = tpu.matmul %9, %3, %cst {dimension_numbers = #tpu.dot_dimension_numbers<[1], [0], [0], [1], [0, 0, 1, 1], [], []>} : vector<2x128xbf16>, vector<128x512xbf16>, vector<2x512xf32> -> vector<2x512xf32>
    %11 = arith.addf %8, %10 : vector<2x512xf32>
    %12 = vector.extract_strided_slice %11 {offsets = [0, 0], sizes = [2, 128], strides = [1, 1]} : vector<2x512xf32> to vector<2x128xf32>
    %13 = arith.negf %12 : vector<2x128xf32>
    %14 = math.exp %13 : vector<2x128xf32>
    %cst_9 = arith.constant 1.000000e+00 : f32
    %15 = vector.broadcast %cst_9 : f32 to vector<2x128xf32>
    %16 = arith.addf %15, %14 : vector<2x128xf32>
    %17 = arith.divf %15, %16 : vector<2x128xf32>
    %18 = vector.extract_strided_slice %11 {offsets = [0, 128], sizes = [2, 128], strides = [1, 1]} : vector<2x512xf32> to vector<2x128xf32>
    %19 = arith.negf %18 : vector<2x128xf32>
    %20 = math.exp %19 : vector<2x128xf32>
    %cst_10 = arith.constant 1.000000e+00 : f32
    %21 = vector.broadcast %cst_10 : f32 to vector<2x128xf32>
    %22 = arith.addf %21, %20 : vector<2x128xf32>
    %23 = arith.divf %21, %22 : vector<2x128xf32>
    %24 = vector.extract_strided_slice %11 {offsets = [0, 256], sizes = [2, 128], strides = [1, 1]} : vector<2x512xf32> to vector<2x128xf32>
    %25 = math.tanh %24 : vector<2x128xf32>
    %26 = vector.extract_strided_slice %11 {offsets = [0, 384], sizes = [2, 128], strides = [1, 1]} : vector<2x512xf32> to vector<2x128xf32>
    %27 = arith.negf %26 : vector<2x128xf32>
    %28 = math.exp %27 : vector<2x128xf32>
    %cst_11 = arith.constant 1.000000e+00 : f32
    %29 = vector.broadcast %cst_11 : f32 to vector<2x128xf32>
    %30 = arith.addf %29, %28 : vector<2x128xf32>
    %31 = arith.divf %29, %30 : vector<2x128xf32>
    %32 = arith.mulf %23, %5 : vector<2x128xf32>
    %33 = arith.mulf %17, %25 : vector<2x128xf32>
    %34 = arith.addf %32, %33 : vector<2x128xf32>
    %35 = math.tanh %34 : vector<2x128xf32>
    %36 = arith.mulf %31, %35 : vector<2x128xf32>
    %c0_12 = arith.constant 0 : index
    %c0_13 = arith.constant 0 : index
    %37 = vector.load %arg6[%c0_12, %c0_13] : memref<2x128xf32, #tpu.memory_space<vmem>>, vector<2x128xf32>
    tpu.vector_store %arg6[%c0_12, %c0_13], %36 {strides = array<i32>} : memref<2x128xf32, #tpu.memory_space<vmem>>, vector<2x128xf32>,
    %c0_14 = arith.constant 0 : index
    %c0_15 = arith.constant 0 : index
    %38 = vector.load %arg7[%c0_14, %c0_15] : memref<2x128xf32, #tpu.memory_space<vmem>>, vector<2x128xf32>
    tpu.vector_store %arg7[%c0_14, %c0_15], %34 {strides = array<i32>} : memref<2x128xf32, #tpu.memory_space<vmem>>, vector<2x128xf32>,
    %39 = arith.truncf %36 : vector<2x128xf32> to vector<2x128xbf16>
    %40 = arith.index_cast %c0_i32_2 : i32 to index
    %c0_16 = arith.constant 0 : index
    %c0_17 = arith.constant 0 : index
    %41 = vector.load %arg3[%40, %c0_16, %c0_17] : memref<8x2x128xbf16, #tpu.memory_space<vmem>>, vector<1x2x128xbf16>
    %42 = vector.shape_cast %41 : vector<1x2x128xbf16> to vector<2x128xbf16>
    %43 = vector.shape_cast %39 : vector<2x128xbf16> to vector<1x2x128xbf16>
    tpu.vector_store %arg3[%40, %c0_16, %c0_17], %43 {strides = array<i32>} : memref<8x2x128xbf16, #tpu.memory_space<vmem>>, vector<1x2x128xbf16>,
    %c1_i32 = arith.constant 1 : i32
    %c0_18 = arith.constant 0 : index
    %c0_19 = arith.constant 0 : index
    %44 = vector.load %arg6[%c0_18, %c0_19] : memref<2x128xf32, #tpu.memory_space<vmem>>, vector<2x128xf32>
    %c0_20 = arith.constant 0 : index
    %c0_21 = arith.constant 0 : index
    %45 = vector.load %arg7[%c0_20, %c0_21] : memref<2x128xf32, #tpu.memory_space<vmem>>, vector<2x128xf32>
    %46 = arith.index_cast %c1_i32 : i32 to index
    %c0_22 = arith.constant 0 : index
    %c0_23 = arith.constant 0 : index
    %47 = vector.load %arg1[%46, %c0_22, %c0_23] : memref<8x2x512xf32, #tpu.memory_space<vmem>>, vector<1x2x512xf32>
    %48 = vector.shape_cast %47 : vector<1x2x512xf32> to vector<2x512xf32>
    %49 = arith.truncf %44 : vector<2x128xf32> to vector<2x128xbf16>
    %cst_24 = arith.constant dense<0.000000e+00> : vector<2x512xf32>
    %50 = tpu.matmul %49, %3, %cst_24 {dimension_numbers = #tpu.dot_dimension_numbers<[1], [0], [0], [1], [0, 0, 1, 1], [], []>} : vector<2x128xbf16>, vector<128x512xbf16>, vector<2x512xf32> -> vector<2x512xf32>
    %51 = arith.addf %48, %50 : vector<2x512xf32>
    %52 = vector.extract_strided_slice %51 {offsets = [0, 0], sizes = [2, 128], strides = [1, 1]} : vector<2x512xf32> to vector<2x128xf32>
    %53 = arith.negf %52 : vector<2x128xf32>
    %54 = math.exp %53 : vector<2x128xf32>
    %cst_25 = arith.constant 1.000000e+00 : f32
    %55 = vector.broadcast %cst_25 : f32 to vector<2x128xf32>
    %56 = arith.addf %55, %54 : vector<2x128xf32>
    %57 = arith.divf %55, %56 : vector<2x128xf32>
    %58 = vector.extract_strided_slice %51 {offsets = [0, 128], sizes = [2, 128], strides = [1, 1]} : vector<2x512xf32> to vector<2x128xf32>
    %59 = arith.negf %58 : vector<2x128xf32>
    %60 = math.exp %59 : vector<2x128xf32>
    %cst_26 = arith.constant 1.000000e+00 : f32
    %61 = vector.broadcast %cst_26 : f32 to vector<2x128xf32>
    %62 = arith.addf %61, %60 : vector<2x128xf32>
    %63 = arith.divf %61, %62 : vector<2x128xf32>
    %64 = vector.extract_strided_slice %51 {offsets = [0, 256], sizes = [2, 128], strides = [1, 1]} : vector<2x512xf32> to vector<2x128xf32>
    %65 = math.tanh %64 : vector<2x128xf32>
    %66 = vector.extract_strided_slice %51 {offsets = [0, 384], sizes = [2, 128], strides = [1, 1]} : vector<2x512xf32> to vector<2x128xf32>
    %67 = arith.negf %66 : vector<2x128xf32>
    %68 = math.exp %67 : vector<2x128xf32>
    %cst_27 = arith.constant 1.000000e+00 : f32
    %69 = vector.broadcast %cst_27 : f32 to vector<2x128xf32>
    %70 = arith.addf %69, %68 : vector<2x128xf32>
    %71 = arith.divf %69, %70 : vector<2x128xf32>
    %72 = arith.mulf %63, %45 : vector<2x128xf32>
    %73 = arith.mulf %57, %65 : vector<2x128xf32>
    %74 = arith.addf %72, %73 : vector<2x128xf32>
    %75 = math.tanh %74 : vector<2x128xf32>
    %76 = arith.mulf %71, %75 : vector<2x128xf32>
    %c0_28 = arith.constant 0 : index
    %c0_29 = arith.constant 0 : index
    %77 = vector.load %arg6[%c0_28, %c0_29] : memref<2x128xf32, #tpu.memory_space<vmem>>, vector<2x128xf32>
    tpu.vector_store %arg6[%c0_28, %c0_29], %76 {strides = array<i32>} : memref<2x128xf32, #tpu.memory_space<vmem>>, vector<2x128xf32>,
    %c0_30 = arith.constant 0 : index
    %c0_31 = arith.constant 0 : index
    %78 = vector.load %arg7[%c0_30, %c0_31] : memref<2x128xf32, #tpu.memory_space<vmem>>, vector<2x128xf32>
    tpu.vector_store %arg7[%c0_30, %c0_31], %74 {strides = array<i32>} : memref<2x128xf32, #tpu.memory_space<vmem>>, vector<2x128xf32>,
    %79 = arith.truncf %76 : vector<2x128xf32> to vector<2x128xbf16>
    %80 = arith.index_cast %c1_i32 : i32 to index
    %c0_32 = arith.constant 0 : index
    %c0_33 = arith.constant 0 : index
    %81 = vector.load %arg3[%80, %c0_32, %c0_33] : memref<8x2x128xbf16, #tpu.memory_space<vmem>>, vector<1x2x128xbf16>
    %82 = vector.shape_cast %81 : vector<1x2x128xbf16> to vector<2x128xbf16>
    %83 = vector.shape_cast %79 : vector<2x128xbf16> to vector<1x2x128xbf16>
    tpu.vector_store %arg3[%80, %c0_32, %c0_33], %83 {strides = array<i32>} : memref<8x2x128xbf16, #tpu.memory_space<vmem>>, vector<1x2x128xbf16>,
    %c2_i32 = arith.constant 2 : i32
    %c0_34 = arith.constant 0 : index
    %c0_35 = arith.constant 0 : index
    %84 = vector.load %arg6[%c0_34, %c0_35] : memref<2x128xf32, #tpu.memory_space<vmem>>, vector<2x128xf32>
    %c0_36 = arith.constant 0 : index
    %c0_37 = arith.constant 0 : index
    %85 = vector.load %arg7[%c0_36, %c0_37] : memref<2x128xf32, #tpu.memory_space<vmem>>, vector<2x128xf32>
    %86 = arith.index_cast %c2_i32 : i32 to index
    %c0_38 = arith.constant 0 : index
    %c0_39 = arith.constant 0 : index
    %87 = vector.load %arg1[%86, %c0_38, %c0_39] : memref<8x2x512xf32, #tpu.memory_space<vmem>>, vector<1x2x512xf32>
    %88 = vector.shape_cast %87 : vector<1x2x512xf32> to vector<2x512xf32>
    %89 = arith.truncf %84 : vector<2x128xf32> to vector<2x128xbf16>
    %cst_40 = arith.constant dense<0.000000e+00> : vector<2x512xf32>
    %90 = tpu.matmul %89, %3, %cst_40 {dimension_numbers = #tpu.dot_dimension_numbers<[1], [0], [0], [1], [0, 0, 1, 1], [], []>} : vector<2x128xbf16>, vector<128x512xbf16>, vector<2x512xf32> -> vector<2x512xf32>
    %91 = arith.addf %88, %90 : vector<2x512xf32>
    %92 = vector.extract_strided_slice %91 {offsets = [0, 0], sizes = [2, 128], strides = [1, 1]} : vector<2x512xf32> to vector<2x128xf32>
    %93 = arith.negf %92 : vector<2x128xf32>
    %94 = math.exp %93 : vector<2x128xf32>
    %cst_41 = arith.constant 1.000000e+00 : f32
    %95 = vector.broadcast %cst_41 : f32 to vector<2x128xf32>
    %96 = arith.addf %95, %94 : vector<2x128xf32>
    %97 = arith.divf %95, %96 : vector<2x128xf32>
    %98 = vector.extract_strided_slice %91 {offsets = [0, 128], sizes = [2, 128], strides = [1, 1]} : vector<2x512xf32> to vector<2x128xf32>
    %99 = arith.negf %98 : vector<2x128xf32>
    %100 = math.exp %99 : vector<2x128xf32>
    %cst_42 = arith.constant 1.000000e+00 : f32
    %101 = vector.broadcast %cst_42 : f32 to vector<2x128xf32>
    %102 = arith.addf %101, %100 : vector<2x128xf32>
    %103 = arith.divf %101, %102 : vector<2x128xf32>
    %104 = vector.extract_strided_slice %91 {offsets = [0, 256], sizes = [2, 128], strides = [1, 1]} : vector<2x512xf32> to vector<2x128xf32>
    %105 = math.tanh %104 : vector<2x128xf32>
    %106 = vector.extract_strided_slice %91 {offsets = [0, 384], sizes = [2, 128], strides = [1, 1]} : vector<2x512xf32> to vector<2x128xf32>
    %107 = arith.negf %106 : vector<2x128xf32>
    %108 = math.exp %107 : vector<2x128xf32>
    %cst_43 = arith.constant 1.000000e+00 : f32
    %109 = vector.broadcast %cst_43 : f32 to vector<2x128xf32>
    %110 = arith.addf %109, %108 : vector<2x128xf32>
    %111 = arith.divf %109, %110 : vector<2x128xf32>
    %112 = arith.mulf %103, %85 : vector<2x128xf32>
    %113 = arith.mulf %97, %105 : vector<2x128xf32>
    %114 = arith.addf %112, %113 : vector<2x128xf32>
    %115 = math.tanh %114 : vector<2x128xf32>
    %116 = arith.mulf %111, %115 : vector<2x128xf32>
    %c0_44 = arith.constant 0 : index
    %c0_45 = arith.constant 0 : index
    %117 = vector.load %arg6[%c0_44, %c0_45] : memref<2x128xf32, #tpu.memory_space<vmem>>, vector<2x128xf32>
    tpu.vector_store %arg6[%c0_44, %c0_45], %116 {strides = array<i32>} : memref<2x128xf32, #tpu.memory_space<vmem>>, vector<2x128xf32>,
    %c0_46 = arith.constant 0 : index
    %c0_47 = arith.constant 0 : index
    %118 = vector.load %arg7[%c0_46, %c0_47] : memref<2x128xf32, #tpu.memory_space<vmem>>, vector<2x128xf32>
    tpu.vector_store %arg7[%c0_46, %c0_47], %114 {strides = array<i32>} : memref<2x128xf32, #tpu.memory_space<vmem>>, vector<2x128xf32>,
    %119 = arith.truncf %116 : vector<2x128xf32> to vector<2x128xbf16>
    %120 = arith.index_cast %c2_i32 : i32 to index
    %c0_48 = arith.constant 0 : index
    %c0_49 = arith.constant 0 : index
    %121 = vector.load %arg3[%120, %c0_48, %c0_49] : memref<8x2x128xbf16, #tpu.memory_space<vmem>>, vector<1x2x128xbf16>
    %122 = vector.shape_cast %121 : vector<1x2x128xbf16> to vector<2x128xbf16>
    %123 = vector.shape_cast %119 : vector<2x128xbf16> to vector<1x2x128xbf16>
    tpu.vector_store %arg3[%120, %c0_48, %c0_49], %123 {strides = array<i32>} : memref<8x2x128xbf16, #tpu.memory_space<vmem>>, vector<1x2x128xbf16>,
    %c3_i32 = arith.constant 3 : i32
    %c0_50 = arith.constant 0 : index
    %c0_51 = arith.constant 0 : index
    %124 = vector.load %arg6[%c0_50, %c0_51] : memref<2x128xf32, #tpu.memory_space<vmem>>, vector<2x128xf32>
    %c0_52 = arith.constant 0 : index
    %c0_53 = arith.constant 0 : index
    %125 = vector.load %arg7[%c0_52, %c0_53] : memref<2x128xf32, #tpu.memory_space<vmem>>, vector<2x128xf32>
    %126 = arith.index_cast %c3_i32 : i32 to index
    %c0_54 = arith.constant 0 : index
    %c0_55 = arith.constant 0 : index
    %127 = vector.load %arg1[%126, %c0_54, %c0_55] : memref<8x2x512xf32, #tpu.memory_space<vmem>>, vector<1x2x512xf32>
    %128 = vector.shape_cast %127 : vector<1x2x512xf32> to vector<2x512xf32>
    %129 = arith.truncf %124 : vector<2x128xf32> to vector<2x128xbf16>
    %cst_56 = arith.constant dense<0.000000e+00> : vector<2x512xf32>
    %130 = tpu.matmul %129, %3, %cst_56 {dimension_numbers = #tpu.dot_dimension_numbers<[1], [0], [0], [1], [0, 0, 1, 1], [], []>} : vector<2x128xbf16>, vector<128x512xbf16>, vector<2x512xf32> -> vector<2x512xf32>
    %131 = arith.addf %128, %130 : vector<2x512xf32>
    %132 = vector.extract_strided_slice %131 {offsets = [0, 0], sizes = [2, 128], strides = [1, 1]} : vector<2x512xf32> to vector<2x128xf32>
    %133 = arith.negf %132 : vector<2x128xf32>
    %134 = math.exp %133 : vector<2x128xf32>
    %cst_57 = arith.constant 1.000000e+00 : f32
    %135 = vector.broadcast %cst_57 : f32 to vector<2x128xf32>
    %136 = arith.addf %135, %134 : vector<2x128xf32>
    %137 = arith.divf %135, %136 : vector<2x128xf32>
    %138 = vector.extract_strided_slice %131 {offsets = [0, 128], sizes = [2, 128], strides = [1, 1]} : vector<2x512xf32> to vector<2x128xf32>
    %139 = arith.negf %138 : vector<2x128xf32>
    %140 = math.exp %139 : vector<2x128xf32>
    %cst_58 = arith.constant 1.000000e+00 : f32
    %141 = vector.broadcast %cst_58 : f32 to vector<2x128xf32>
    %142 = arith.addf %141, %140 : vector<2x128xf32>
    %143 = arith.divf %141, %142 : vector<2x128xf32>
    %144 = vector.extract_strided_slice %131 {offsets = [0, 256], sizes = [2, 128], strides = [1, 1]} : vector<2x512xf32> to vector<2x128xf32>
    %145 = math.tanh %144 : vector<2x128xf32>
    %146 = vector.extract_strided_slice %131 {offsets = [0, 384], sizes = [2, 128], strides = [1, 1]} : vector<2x512xf32> to vector<2x128xf32>
    %147 = arith.negf %146 : vector<2x128xf32>
    %148 = math.exp %147 : vector<2x128xf32>
    %cst_59 = arith.constant 1.000000e+00 : f32
    %149 = vector.broadcast %cst_59 : f32 to vector<2x128xf32>
    %150 = arith.addf %149, %148 : vector<2x128xf32>
    %151 = arith.divf %149, %150 : vector<2x128xf32>
    %152 = arith.mulf %143, %125 : vector<2x128xf32>
    %153 = arith.mulf %137, %145 : vector<2x128xf32>
    %154 = arith.addf %152, %153 : vector<2x128xf32>
    %155 = math.tanh %154 : vector<2x128xf32>
    %156 = arith.mulf %151, %155 : vector<2x128xf32>
    %c0_60 = arith.constant 0 : index
    %c0_61 = arith.constant 0 : index
    %157 = vector.load %arg6[%c0_60, %c0_61] : memref<2x128xf32, #tpu.memory_space<vmem>>, vector<2x128xf32>
    tpu.vector_store %arg6[%c0_60, %c0_61], %156 {strides = array<i32>} : memref<2x128xf32, #tpu.memory_space<vmem>>, vector<2x128xf32>,
    %c0_62 = arith.constant 0 : index
    %c0_63 = arith.constant 0 : index
    %158 = vector.load %arg7[%c0_62, %c0_63] : memref<2x128xf32, #tpu.memory_space<vmem>>, vector<2x128xf32>
    tpu.vector_store %arg7[%c0_62, %c0_63], %154 {strides = array<i32>} : memref<2x128xf32, #tpu.memory_space<vmem>>, vector<2x128xf32>,
    %159 = arith.truncf %156 : vector<2x128xf32> to vector<2x128xbf16>
    %160 = arith.index_cast %c3_i32 : i32 to index
    %c0_64 = arith.constant 0 : index
    %c0_65 = arith.constant 0 : index
    %161 = vector.load %arg3[%160, %c0_64, %c0_65] : memref<8x2x128xbf16, #tpu.memory_space<vmem>>, vector<1x2x128xbf16>
    %162 = vector.shape_cast %161 : vector<1x2x128xbf16> to vector<2x128xbf16>
    %163 = vector.shape_cast %159 : vector<2x128xbf16> to vector<1x2x128xbf16>
    tpu.vector_store %arg3[%160, %c0_64, %c0_65], %163 {strides = array<i32>} : memref<8x2x128xbf16, #tpu.memory_space<vmem>>, vector<1x2x128xbf16>,
    %c4_i32 = arith.constant 4 : i32
    %c0_66 = arith.constant 0 : index
    %c0_67 = arith.constant 0 : index
    %164 = vector.load %arg6[%c0_66, %c0_67] : memref<2x128xf32, #tpu.memory_space<vmem>>, vector<2x128xf32>
    %c0_68 = arith.constant 0 : index
    %c0_69 = arith.constant 0 : index
    %165 = vector.load %arg7[%c0_68, %c0_69] : memref<2x128xf32, #tpu.memory_space<vmem>>, vector<2x128xf32>
    %166 = arith.index_cast %c4_i32 : i32 to index
    %c0_70 = arith.constant 0 : index
    %c0_71 = arith.constant 0 : index
    %167 = vector.load %arg1[%166, %c0_70, %c0_71] : memref<8x2x512xf32, #tpu.memory_space<vmem>>, vector<1x2x512xf32>
    %168 = vector.shape_cast %167 : vector<1x2x512xf32> to vector<2x512xf32>
    %169 = arith.truncf %164 : vector<2x128xf32> to vector<2x128xbf16>
    %cst_72 = arith.constant dense<0.000000e+00> : vector<2x512xf32>
    %170 = tpu.matmul %169, %3, %cst_72 {dimension_numbers = #tpu.dot_dimension_numbers<[1], [0], [0], [1], [0, 0, 1, 1], [], []>} : vector<2x128xbf16>, vector<128x512xbf16>, vector<2x512xf32> -> vector<2x512xf32>
    %171 = arith.addf %168, %170 : vector<2x512xf32>
    %172 = vector.extract_strided_slice %171 {offsets = [0, 0], sizes = [2, 128], strides = [1, 1]} : vector<2x512xf32> to vector<2x128xf32>
    %173 = arith.negf %172 : vector<2x128xf32>
    %174 = math.exp %173 : vector<2x128xf32>
    %cst_73 = arith.constant 1.000000e+00 : f32
    %175 = vector.broadcast %cst_73 : f32 to vector<2x128xf32>
    %176 = arith.addf %175, %174 : vector<2x128xf32>
    %177 = arith.divf %175, %176 : vector<2x128xf32>
    %178 = vector.extract_strided_slice %171 {offsets = [0, 128], sizes = [2, 128], strides = [1, 1]} : vector<2x512xf32> to vector<2x128xf32>
    %179 = arith.negf %178 : vector<2x128xf32>
    %180 = math.exp %179 : vector<2x128xf32>
    %cst_74 = arith.constant 1.000000e+00 : f32
    %181 = vector.broadcast %cst_74 : f32 to vector<2x128xf32>
    %182 = arith.addf %181, %180 : vector<2x128xf32>
    %183 = arith.divf %181, %182 : vector<2x128xf32>
    %184 = vector.extract_strided_slice %171 {offsets = [0, 256], sizes = [2, 128], strides = [1, 1]} : vector<2x512xf32> to vector<2x128xf32>
    %185 = math.tanh %184 : vector<2x128xf32>
    %186 = vector.extract_strided_slice %171 {offsets = [0, 384], sizes = [2, 128], strides = [1, 1]} : vector<2x512xf32> to vector<2x128xf32>
    %187 = arith.negf %186 : vector<2x128xf32>
    %188 = math.exp %187 : vector<2x128xf32>
    %cst_75 = arith.constant 1.000000e+00 : f32
    %189 = vector.broadcast %cst_75 : f32 to vector<2x128xf32>
    %190 = arith.addf %189, %188 : vector<2x128xf32>
    %191 = arith.divf %189, %190 : vector<2x128xf32>
    %192 = arith.mulf %183, %165 : vector<2x128xf32>
    %193 = arith.mulf %177, %185 : vector<2x128xf32>
    %194 = arith.addf %192, %193 : vector<2x128xf32>
    %195 = math.tanh %194 : vector<2x128xf32>
    %196 = arith.mulf %191, %195 : vector<2x128xf32>
    %c0_76 = arith.constant 0 : index
    %c0_77 = arith.constant 0 : index
    %197 = vector.load %arg6[%c0_76, %c0_77] : memref<2x128xf32, #tpu.memory_space<vmem>>, vector<2x128xf32>
    tpu.vector_store %arg6[%c0_76, %c0_77], %196 {strides = array<i32>} : memref<2x128xf32, #tpu.memory_space<vmem>>, vector<2x128xf32>,
    %c0_78 = arith.constant 0 : index
    %c0_79 = arith.constant 0 : index
    %198 = vector.load %arg7[%c0_78, %c0_79] : memref<2x128xf32, #tpu.memory_space<vmem>>, vector<2x128xf32>
    tpu.vector_store %arg7[%c0_78, %c0_79], %194 {strides = array<i32>} : memref<2x128xf32, #tpu.memory_space<vmem>>, vector<2x128xf32>,
    %199 = arith.truncf %196 : vector<2x128xf32> to vector<2x128xbf16>
    %200 = arith.index_cast %c4_i32 : i32 to index
    %c0_80 = arith.constant 0 : index
    %c0_81 = arith.constant 0 : index
    %201 = vector.load %arg3[%200, %c0_80, %c0_81] : memref<8x2x128xbf16, #tpu.memory_space<vmem>>, vector<1x2x128xbf16>
    %202 = vector.shape_cast %201 : vector<1x2x128xbf16> to vector<2x128xbf16>
    %203 = vector.shape_cast %199 : vector<2x128xbf16> to vector<1x2x128xbf16>
    tpu.vector_store %arg3[%200, %c0_80, %c0_81], %203 {strides = array<i32>} : memref<8x2x128xbf16, #tpu.memory_space<vmem>>, vector<1x2x128xbf16>,
    %c5_i32 = arith.constant 5 : i32
    %c0_82 = arith.constant 0 : index
    %c0_83 = arith.constant 0 : index
    %204 = vector.load %arg6[%c0_82, %c0_83] : memref<2x128xf32, #tpu.memory_space<vmem>>, vector<2x128xf32>
    %c0_84 = arith.constant 0 : index
    %c0_85 = arith.constant 0 : index
    %205 = vector.load %arg7[%c0_84, %c0_85] : memref<2x128xf32, #tpu.memory_space<vmem>>, vector<2x128xf32>
    %206 = arith.index_cast %c5_i32 : i32 to index
    %c0_86 = arith.constant 0 : index
    %c0_87 = arith.constant 0 : index
    %207 = vector.load %arg1[%206, %c0_86, %c0_87] : memref<8x2x512xf32, #tpu.memory_space<vmem>>, vector<1x2x512xf32>
    %208 = vector.shape_cast %207 : vector<1x2x512xf32> to vector<2x512xf32>
    %209 = arith.truncf %204 : vector<2x128xf32> to vector<2x128xbf16>
    %cst_88 = arith.constant dense<0.000000e+00> : vector<2x512xf32>
    %210 = tpu.matmul %209, %3, %cst_88 {dimension_numbers = #tpu.dot_dimension_numbers<[1], [0], [0], [1], [0, 0, 1, 1], [], []>} : vector<2x128xbf16>, vector<128x512xbf16>, vector<2x512xf32> -> vector<2x512xf32>
    %211 = arith.addf %208, %210 : vector<2x512xf32>
    %212 = vector.extract_strided_slice %211 {offsets = [0, 0], sizes = [2, 128], strides = [1, 1]} : vector<2x512xf32> to vector<2x128xf32>
    %213 = arith.negf %212 : vector<2x128xf32>
    %214 = math.exp %213 : vector<2x128xf32>
    %cst_89 = arith.constant 1.000000e+00 : f32
    %215 = vector.broadcast %cst_89 : f32 to vector<2x128xf32>
    %216 = arith.addf %215, %214 : vector<2x128xf32>
    %217 = arith.divf %215, %216 : vector<2x128xf32>
    %218 = vector.extract_strided_slice %211 {offsets = [0, 128], sizes = [2, 128], strides = [1, 1]} : vector<2x512xf32> to vector<2x128xf32>
    %219 = arith.negf %218 : vector<2x128xf32>
    %220 = math.exp %219 : vector<2x128xf32>
    %cst_90 = arith.constant 1.000000e+00 : f32
    %221 = vector.broadcast %cst_90 : f32 to vector<2x128xf32>
    %222 = arith.addf %221, %220 : vector<2x128xf32>
    %223 = arith.divf %221, %222 : vector<2x128xf32>
    %224 = vector.extract_strided_slice %211 {offsets = [0, 256], sizes = [2, 128], strides = [1, 1]} : vector<2x512xf32> to vector<2x128xf32>
    %225 = math.tanh %224 : vector<2x128xf32>
    %226 = vector.extract_strided_slice %211 {offsets = [0, 384], sizes = [2, 128], strides = [1, 1]} : vector<2x512xf32> to vector<2x128xf32>
    %227 = arith.negf %226 : vector<2x128xf32>
    %228 = math.exp %227 : vector<2x128xf32>
    %cst_91 = arith.constant 1.000000e+00 : f32
    %229 = vector.broadcast %cst_91 : f32 to vector<2x128xf32>
    %230 = arith.addf %229, %228 : vector<2x128xf32>
    %231 = arith.divf %229, %230 : vector<2x128xf32>
    %232 = arith.mulf %223, %205 : vector<2x128xf32>
    %233 = arith.mulf %217, %225 : vector<2x128xf32>
    %234 = arith.addf %232, %233 : vector<2x128xf32>
    %235 = math.tanh %234 : vector<2x128xf32>
    %236 = arith.mulf %231, %235 : vector<2x128xf32>
    %c0_92 = arith.constant 0 : index
    %c0_93 = arith.constant 0 : index
    %237 = vector.load %arg6[%c0_92, %c0_93] : memref<2x128xf32, #tpu.memory_space<vmem>>, vector<2x128xf32>
    tpu.vector_store %arg6[%c0_92, %c0_93], %236 {strides = array<i32>} : memref<2x128xf32, #tpu.memory_space<vmem>>, vector<2x128xf32>,
    %c0_94 = arith.constant 0 : index
    %c0_95 = arith.constant 0 : index
    %238 = vector.load %arg7[%c0_94, %c0_95] : memref<2x128xf32, #tpu.memory_space<vmem>>, vector<2x128xf32>
    tpu.vector_store %arg7[%c0_94, %c0_95], %234 {strides = array<i32>} : memref<2x128xf32, #tpu.memory_space<vmem>>, vector<2x128xf32>,
    %239 = arith.truncf %236 : vector<2x128xf32> to vector<2x128xbf16>
    %240 = arith.index_cast %c5_i32 : i32 to index
    %c0_96 = arith.constant 0 : index
    %c0_97 = arith.constant 0 : index
    %241 = vector.load %arg3[%240, %c0_96, %c0_97] : memref<8x2x128xbf16, #tpu.memory_space<vmem>>, vector<1x2x128xbf16>
    %242 = vector.shape_cast %241 : vector<1x2x128xbf16> to vector<2x128xbf16>
    %243 = vector.shape_cast %239 : vector<2x128xbf16> to vector<1x2x128xbf16>
    tpu.vector_store %arg3[%240, %c0_96, %c0_97], %243 {strides = array<i32>} : memref<8x2x128xbf16, #tpu.memory_space<vmem>>, vector<1x2x128xbf16>,
    %c6_i32 = arith.constant 6 : i32
    %c0_98 = arith.constant 0 : index
    %c0_99 = arith.constant 0 : index
    %244 = vector.load %arg6[%c0_98, %c0_99] : memref<2x128xf32, #tpu.memory_space<vmem>>, vector<2x128xf32>
    %c0_100 = arith.constant 0 : index
    %c0_101 = arith.constant 0 : index
    %245 = vector.load %arg7[%c0_100, %c0_101] : memref<2x128xf32, #tpu.memory_space<vmem>>, vector<2x128xf32>
    %246 = arith.index_cast %c6_i32 : i32 to index
    %c0_102 = arith.constant 0 : index
    %c0_103 = arith.constant 0 : index
    %247 = vector.load %arg1[%246, %c0_102, %c0_103] : memref<8x2x512xf32, #tpu.memory_space<vmem>>, vector<1x2x512xf32>
    %248 = vector.shape_cast %247 : vector<1x2x512xf32> to vector<2x512xf32>
    %249 = arith.truncf %244 : vector<2x128xf32> to vector<2x128xbf16>
    %cst_104 = arith.constant dense<0.000000e+00> : vector<2x512xf32>
    %250 = tpu.matmul %249, %3, %cst_104 {dimension_numbers = #tpu.dot_dimension_numbers<[1], [0], [0], [1], [0, 0, 1, 1], [], []>} : vector<2x128xbf16>, vector<128x512xbf16>, vector<2x512xf32> -> vector<2x512xf32>
    %251 = arith.addf %248, %250 : vector<2x512xf32>
    %252 = vector.extract_strided_slice %251 {offsets = [0, 0], sizes = [2, 128], strides = [1, 1]} : vector<2x512xf32> to vector<2x128xf32>
    %253 = arith.negf %252 : vector<2x128xf32>
    %254 = math.exp %253 : vector<2x128xf32>
    %cst_105 = arith.constant 1.000000e+00 : f32
    %255 = vector.broadcast %cst_105 : f32 to vector<2x128xf32>
    %256 = arith.addf %255, %254 : vector<2x128xf32>
    %257 = arith.divf %255, %256 : vector<2x128xf32>
    %258 = vector.extract_strided_slice %251 {offsets = [0, 128], sizes = [2, 128], strides = [1, 1]} : vector<2x512xf32> to vector<2x128xf32>
    %259 = arith.negf %258 : vector<2x128xf32>
    %260 = math.exp %259 : vector<2x128xf32>
    %cst_106 = arith.constant 1.000000e+00 : f32
    %261 = vector.broadcast %cst_106 : f32 to vector<2x128xf32>
    %262 = arith.addf %261, %260 : vector<2x128xf32>
    %263 = arith.divf %261, %262 : vector<2x128xf32>
    %264 = vector.extract_strided_slice %251 {offsets = [0, 256], sizes = [2, 128], strides = [1, 1]} : vector<2x512xf32> to vector<2x128xf32>
    %265 = math.tanh %264 : vector<2x128xf32>
    %266 = vector.extract_strided_slice %251 {offsets = [0, 384], sizes = [2, 128], strides = [1, 1]} : vector<2x512xf32> to vector<2x128xf32>
    %267 = arith.negf %266 : vector<2x128xf32>
    %268 = math.exp %267 : vector<2x128xf32>
    %cst_107 = arith.constant 1.000000e+00 : f32
    %269 = vector.broadcast %cst_107 : f32 to vector<2x128xf32>
    %270 = arith.addf %269, %268 : vector<2x128xf32>
    %271 = arith.divf %269, %270 : vector<2x128xf32>
    %272 = arith.mulf %263, %245 : vector<2x128xf32>
    %273 = arith.mulf %257, %265 : vector<2x128xf32>
    %274 = arith.addf %272, %273 : vector<2x128xf32>
    %275 = math.tanh %274 : vector<2x128xf32>
    %276 = arith.mulf %271, %275 : vector<2x128xf32>
    %c0_108 = arith.constant 0 : index
    %c0_109 = arith.constant 0 : index
    %277 = vector.load %arg6[%c0_108, %c0_109] : memref<2x128xf32, #tpu.memory_space<vmem>>, vector<2x128xf32>
    tpu.vector_store %arg6[%c0_108, %c0_109], %276 {strides = array<i32>} : memref<2x128xf32, #tpu.memory_space<vmem>>, vector<2x128xf32>,
    %c0_110 = arith.constant 0 : index
    %c0_111 = arith.constant 0 : index
    %278 = vector.load %arg7[%c0_110, %c0_111] : memref<2x128xf32, #tpu.memory_space<vmem>>, vector<2x128xf32>
    tpu.vector_store %arg7[%c0_110, %c0_111], %274 {strides = array<i32>} : memref<2x128xf32, #tpu.memory_space<vmem>>, vector<2x128xf32>,
    %279 = arith.truncf %276 : vector<2x128xf32> to vector<2x128xbf16>
    %280 = arith.index_cast %c6_i32 : i32 to index
    %c0_112 = arith.constant 0 : index
    %c0_113 = arith.constant 0 : index
    %281 = vector.load %arg3[%280, %c0_112, %c0_113] : memref<8x2x128xbf16, #tpu.memory_space<vmem>>, vector<1x2x128xbf16>
    %282 = vector.shape_cast %281 : vector<1x2x128xbf16> to vector<2x128xbf16>
    %283 = vector.shape_cast %279 : vector<2x128xbf16> to vector<1x2x128xbf16>
    tpu.vector_store %arg3[%280, %c0_112, %c0_113], %283 {strides = array<i32>} : memref<8x2x128xbf16, #tpu.memory_space<vmem>>, vector<1x2x128xbf16>,
    %c7_i32 = arith.constant 7 : i32
    %c0_114 = arith.constant 0 : index
    %c0_115 = arith.constant 0 : index
    %284 = vector.load %arg6[%c0_114, %c0_115] : memref<2x128xf32, #tpu.memory_space<vmem>>, vector<2x128xf32>
    %c0_116 = arith.constant 0 : index
    %c0_117 = arith.constant 0 : index
    %285 = vector.load %arg7[%c0_116, %c0_117] : memref<2x128xf32, #tpu.memory_space<vmem>>, vector<2x128xf32>
    %286 = arith.index_cast %c7_i32 : i32 to index
    %c0_118 = arith.constant 0 : index
    %c0_119 = arith.constant 0 : index
    %287 = vector.load %arg1[%286, %c0_118, %c0_119] : memref<8x2x512xf32, #tpu.memory_space<vmem>>, vector<1x2x512xf32>
    %288 = vector.shape_cast %287 : vector<1x2x512xf32> to vector<2x512xf32>
    %289 = arith.truncf %284 : vector<2x128xf32> to vector<2x128xbf16>
    %cst_120 = arith.constant dense<0.000000e+00> : vector<2x512xf32>
    %290 = tpu.matmul %289, %3, %cst_120 {dimension_numbers = #tpu.dot_dimension_numbers<[1], [0], [0], [1], [0, 0, 1, 1], [], []>} : vector<2x128xbf16>, vector<128x512xbf16>, vector<2x512xf32> -> vector<2x512xf32>
    %291 = arith.addf %288, %290 : vector<2x512xf32>
    %292 = vector.extract_strided_slice %291 {offsets = [0, 0], sizes = [2, 128], strides = [1, 1]} : vector<2x512xf32> to vector<2x128xf32>
    %293 = arith.negf %292 : vector<2x128xf32>
    %294 = math.exp %293 : vector<2x128xf32>
    %cst_121 = arith.constant 1.000000e+00 : f32
    %295 = vector.broadcast %cst_121 : f32 to vector<2x128xf32>
    %296 = arith.addf %295, %294 : vector<2x128xf32>
    %297 = arith.divf %295, %296 : vector<2x128xf32>
    %298 = vector.extract_strided_slice %291 {offsets = [0, 128], sizes = [2, 128], strides = [1, 1]} : vector<2x512xf32> to vector<2x128xf32>
    %299 = arith.negf %298 : vector<2x128xf32>
    %300 = math.exp %299 : vector<2x128xf32>
    %cst_122 = arith.constant 1.000000e+00 : f32
    %301 = vector.broadcast %cst_122 : f32 to vector<2x128xf32>
    %302 = arith.addf %301, %300 : vector<2x128xf32>
    %303 = arith.divf %301, %302 : vector<2x128xf32>
    %304 = vector.extract_strided_slice %291 {offsets = [0, 256], sizes = [2, 128], strides = [1, 1]} : vector<2x512xf32> to vector<2x128xf32>
    %305 = math.tanh %304 : vector<2x128xf32>
    %306 = vector.extract_strided_slice %291 {offsets = [0, 384], sizes = [2, 128], strides = [1, 1]} : vector<2x512xf32> to vector<2x128xf32>
    %307 = arith.negf %306 : vector<2x128xf32>
    %308 = math.exp %307 : vector<2x128xf32>
    %cst_123 = arith.constant 1.000000e+00 : f32
    %309 = vector.broadcast %cst_123 : f32 to vector<2x128xf32>
    %310 = arith.addf %309, %308 : vector<2x128xf32>
    %311 = arith.divf %309, %310 : vector<2x128xf32>
    %312 = arith.mulf %303, %285 : vector<2x128xf32>
    %313 = arith.mulf %297, %305 : vector<2x128xf32>
    %314 = arith.addf %312, %313 : vector<2x128xf32>
    %315 = math.tanh %314 : vector<2x128xf32>
    %316 = arith.mulf %311, %315 : vector<2x128xf32>
    %c0_124 = arith.constant 0 : index
    %c0_125 = arith.constant 0 : index
    %317 = vector.load %arg6[%c0_124, %c0_125] : memref<2x128xf32, #tpu.memory_space<vmem>>, vector<2x128xf32>
    tpu.vector_store %arg6[%c0_124, %c0_125], %316 {strides = array<i32>} : memref<2x128xf32, #tpu.memory_space<vmem>>, vector<2x128xf32>,
    %c0_126 = arith.constant 0 : index
    %c0_127 = arith.constant 0 : index
    %318 = vector.load %arg7[%c0_126, %c0_127] : memref<2x128xf32, #tpu.memory_space<vmem>>, vector<2x128xf32>
    tpu.vector_store %arg7[%c0_126, %c0_127], %314 {strides = array<i32>} : memref<2x128xf32, #tpu.memory_space<vmem>>, vector<2x128xf32>,
    %319 = arith.truncf %316 : vector<2x128xf32> to vector<2x128xbf16>
    %320 = arith.index_cast %c7_i32 : i32 to index
    %c0_128 = arith.constant 0 : index
    %c0_129 = arith.constant 0 : index
    %321 = vector.load %arg3[%320, %c0_128, %c0_129] : memref<8x2x128xbf16, #tpu.memory_space<vmem>>, vector<1x2x128xbf16>
    %322 = vector.shape_cast %321 : vector<1x2x128xbf16> to vector<2x128xbf16>
    %323 = vector.shape_cast %319 : vector<2x128xbf16> to vector<1x2x128xbf16>
    tpu.vector_store %arg3[%320, %c0_128, %c0_129], %323 {strides = array<i32>} : memref<8x2x128xbf16, #tpu.memory_space<vmem>>, vector<1x2x128xbf16>,
    %c8_i32 = arith.constant 8 : i32
    %c0_i32_130 = arith.constant 0 : i32
    %324 = arith.cmpi eq, %arg0, %c0_i32_130 : i32
    %325 = arith.extui %324 : i1 to i32
    %c0_i32_131 = arith.constant 0 : i32
    %326 = arith.cmpi ne, %325, %c0_i32_131 : i32
    scf.if %326 {
      %c0_132 = arith.constant 0 : index
      %c0_133 = arith.constant 0 : index
      %327 = vector.load %arg6[%c0_132, %c0_133] : memref<2x128xf32, #tpu.memory_space<vmem>>, vector<2x128xf32>
      %c0_134 = arith.constant 0 : index
      %c0_135 = arith.constant 0 : index
      %328 = vector.load %arg4[%c0_134, %c0_135] : memref<2x128xf32, #tpu.memory_space<vmem>>, vector<2x128xf32>
      tpu.vector_store %arg4[%c0_134, %c0_135], %327 {strides = array<i32>} : memref<2x128xf32, #tpu.memory_space<vmem>>, vector<2x128xf32>,
      %c0_136 = arith.constant 0 : index
      %c0_137 = arith.constant 0 : index
      %329 = vector.load %arg7[%c0_136, %c0_137] : memref<2x128xf32, #tpu.memory_space<vmem>>, vector<2x128xf32>
      %c0_138 = arith.constant 0 : index
      %c0_139 = arith.constant 0 : index
      %330 = vector.load %arg5[%c0_138, %c0_139] : memref<2x128xf32, #tpu.memory_space<vmem>>, vector<2x128xf32>
      tpu.vector_store %arg5[%c0_138, %c0_139], %329 {strides = array<i32>} : memref<2x128xf32, #tpu.memory_space<vmem>>, vector<2x128xf32>,
    } else {
    }
    return
  }
  func.func @transform_0(%arg0: i32) -> (i32, i32, i32) {
    %c0_i32 = arith.constant 0 : i32
    %c0_i32_0 = arith.constant 0 : i32
    %c0_i32_1 = arith.constant 0 : i32
    return %arg0, %c0_i32, %c0_i32_0 : i32, i32, i32
  }
  func.func @transform_1(%arg0: i32) -> (i32, i32) {
    %c0_i32 = arith.constant 0 : i32
    %c0_i32_0 = arith.constant 0 : i32
    %c0_i32_1 = arith.constant 0 : i32
    return %c0_i32, %c0_i32_0 : i32, i32
  }
  func.func @transform_2(%arg0: i32) -> (i32, i32, i32) {
    %c0_i32 = arith.constant 0 : i32
    %c0_i32_0 = arith.constant 0 : i32
    %c0_i32_1 = arith.constant 0 : i32
    return %arg0, %c0_i32, %c0_i32_0 : i32, i32, i32
  }
  func.func @transform_3(%arg0: i32) -> (i32, i32) {
    %c0_i32 = arith.constant 0 : i32
    %c0_i32_0 = arith.constant 0 : i32
    %c0_i32_1 = arith.constant 0 : i32
    return %c0_i32, %c0_i32_0 : i32, i32
  }
  func.func @transform_4(%arg0: i32) -> (i32, i32) {
    %c0_i32 = arith.constant 0 : i32
    %c0_i32_0 = arith.constant 0 : i32
    %c0_i32_1 = arith.constant 0 : i32
    return %c0_i32, %c0_i32_0 : i32, i32
  }
}

module attributes {stable_mosaic.version = 11 : i64} {
  func.func @matmul_bias_kernel(%arg0: i32, %arg1: i32, %arg2: i32, %arg3: memref<16x128xbf16, #tpu.memory_space<vmem>>, %arg4: memref<128x128xbf16, #tpu.memory_space<vmem>>, %arg5: memref<1x128xf32, #tpu.memory_space<vmem>>, %arg6: memref<16x128xf32, #tpu.memory_space<vmem>>, %arg7: memref<16x128xf32, #tpu.memory_space<vmem>>) attributes {dimension_semantics = [#tpu.dimension_semantics<parallel>, #tpu.dimension_semantics<parallel>, #tpu.dimension_semantics<arbitrary>], iteration_bounds = array<i64: 1, 1, 1>, scalar_prefetch = 0 : i64, scratch_operands = 1 : i64, tpu.core_type = #tpu.core_type<tc>, window_params = [{transform_indices = @transform_0, window_bounds = array<i64: 16, 128>}, {transform_indices = @transform_1, window_bounds = array<i64: 128, 128>}, {transform_indices = @transform_2, window_bounds = array<i64: 1, 128>}, {transform_indices = @transform_3, window_bounds = array<i64: 16, 128>}]} {
    %c0_i32 = arith.constant 0 : i32
    %0 = arith.cmpi eq, %arg2, %c0_i32 : i32
    %1 = arith.extui %0 : i1 to i32
    %c0_i32_0 = arith.constant 0 : i32
    %2 = arith.cmpi ne, %1, %c0_i32_0 : i32
    scf.if %2 {
      %cst_10 = arith.constant 0.000000e+00 : f32
      %12 = vector.broadcast %cst_10 : f32 to vector<16x128xf32>
      %c0_11 = arith.constant 0 : index
      %c0_12 = arith.constant 0 : index
      %13 = vector.load %arg7[%c0_11, %c0_12] : memref<16x128xf32, #tpu.memory_space<vmem>>, vector<16x128xf32>
      tpu.vector_store %arg7[%c0_11, %c0_12], %12 {strides = array<i32>} : memref<16x128xf32, #tpu.memory_space<vmem>>, vector<16x128xf32>,
    } else {
    }
    %c0 = arith.constant 0 : index
    %c0_1 = arith.constant 0 : index
    %3 = vector.load %arg7[%c0, %c0_1] : memref<16x128xf32, #tpu.memory_space<vmem>>, vector<16x128xf32>
    %c0_2 = arith.constant 0 : index
    %c0_3 = arith.constant 0 : index
    %4 = vector.load %arg3[%c0_2, %c0_3] : memref<16x128xbf16, #tpu.memory_space<vmem>>, vector<16x128xbf16>
    %c0_4 = arith.constant 0 : index
    %c0_5 = arith.constant 0 : index
    %5 = vector.load %arg4[%c0_4, %c0_5] : memref<128x128xbf16, #tpu.memory_space<vmem>>, vector<128x128xbf16>
    %cst = arith.constant dense<0.000000e+00> : vector<16x128xf32>
    %6 = tpu.matmul %4, %5, %cst {dimension_numbers = #tpu.dot_dimension_numbers<[1], [0], [0], [1], [0, 0, 1, 1], [], []>} : vector<16x128xbf16>, vector<128x128xbf16>, vector<16x128xf32> -> vector<16x128xf32>
    %7 = arith.addf %3, %6 : vector<16x128xf32>
    %c0_6 = arith.constant 0 : index
    %c0_7 = arith.constant 0 : index
    %8 = vector.load %arg7[%c0_6, %c0_7] : memref<16x128xf32, #tpu.memory_space<vmem>>, vector<16x128xf32>
    tpu.vector_store %arg7[%c0_6, %c0_7], %7 {strides = array<i32>} : memref<16x128xf32, #tpu.memory_space<vmem>>, vector<16x128xf32>,
    %c0_i32_8 = arith.constant 0 : i32
    %9 = arith.cmpi eq, %arg2, %c0_i32_8 : i32
    %10 = arith.extui %9 : i1 to i32
    %c0_i32_9 = arith.constant 0 : i32
    %11 = arith.cmpi ne, %10, %c0_i32_9 : i32
    scf.if %11 {
      %c0_10 = arith.constant 0 : index
      %c0_11 = arith.constant 0 : index
      %12 = vector.load %arg7[%c0_10, %c0_11] : memref<16x128xf32, #tpu.memory_space<vmem>>, vector<16x128xf32>
      %c0_12 = arith.constant 0 : index
      %c0_13 = arith.constant 0 : index
      %13 = vector.load %arg5[%c0_12, %c0_13] : memref<1x128xf32, #tpu.memory_space<vmem>>, vector<1x128xf32>
      %14 = vector.broadcast %13 : vector<1x128xf32> to vector<16x128xf32>
      %15 = arith.addf %12, %14 : vector<16x128xf32>
      %c0_14 = arith.constant 0 : index
      %c0_15 = arith.constant 0 : index
      %16 = vector.load %arg6[%c0_14, %c0_15] : memref<16x128xf32, #tpu.memory_space<vmem>>, vector<16x128xf32>
      tpu.vector_store %arg6[%c0_14, %c0_15], %15 {strides = array<i32>} : memref<16x128xf32, #tpu.memory_space<vmem>>, vector<16x128xf32>,
    } else {
    }
    return
  }
  func.func @transform_0(%arg0: i32, %arg1: i32, %arg2: i32) -> (i32, i32) {
    %c0_i32 = arith.constant 0 : i32
    return %arg0, %arg2 : i32, i32
  }
  func.func @transform_1(%arg0: i32, %arg1: i32, %arg2: i32) -> (i32, i32) {
    %c0_i32 = arith.constant 0 : i32
    return %arg2, %arg1 : i32, i32
  }
  func.func @transform_2(%arg0: i32, %arg1: i32, %arg2: i32) -> (i32, i32) {
    %c0_i32 = arith.constant 0 : i32
    %c0_i32_0 = arith.constant 0 : i32
    return %c0_i32, %arg1 : i32, i32
  }
  func.func @transform_3(%arg0: i32, %arg1: i32, %arg2: i32) -> (i32, i32) {
    %c0_i32 = arith.constant 0 : i32
    return %arg0, %arg1 : i32, i32
  }
}

</mosaic_0001>

<bundles_post_ra>
// kernel: poetry_lstm_forward.9
= control target key start
LH: loop header
LB: loop body
LE: loop exit
PB: predicated region body
PF: predicated region fallthrough
CT: control target
= control target key end

     0   :  { %v248_v1 = vmov 0.0   ;;  %vm249_vm0 = vmmov 0   ;;  %s306_s0 = inlined_call_operand.vmem [shape: bf16[16,128], index: 0, kind: input, shape index: {}]   ;;  %s307_s1 = inlined_call_operand.vmem [shape: bf16[128,128], index: 1, kind: input, shape index: {}]   ;;  %s308_s2 = inlined_call_operand.vmem [shape: f32[1,128], index: 2, kind: input, shape index: {}]   ;;  %s309_s3 = inlined_call_operand.hbm [shape: f32[16,128], index: 3, kind: output, shape index: {}]  }
   0x1   :  { %v217_v0 = vld [vmem:[%s307_s1 + $0x38] sm:$0xff]   ;;  %192 = vmatprep.subr.bf16.mxu0 %v248_v1  ;;  %v218_v2 = vld [vmem:[%s307_s1 + $0x30] sm:$0xff]   ;;  %208 = vmatprep.mubr.msk.bf16.mxu0 %vm249_vm0, %v248_v1  ;;  %v219_v3 = vld [vmem:[%s307_s1 + $0x28] sm:$0xff]  }
   0x2   :  { %193 = vmatpush3.bf16.msra.mxu0 %v217_v0 }
   0x3   :  { %194 = vmatprep.subr.bf16.mxu0 %v248_v1 }
   0x6   :  { %195 = vmatpush3.bf16.msra.mxu0 %v218_v2 }
   0x7   :  { %196 = vmatprep.subr.bf16.mxu0 %v248_v1 }
   0x8   :  { %8 = vsyncpa [#allocation4], 0  ;;  %v220_v4 = vld [vmem:[%s307_s1 + $0x20] sm:$0xff]   ;;  %v221_v5 = vld [vmem:[%s307_s1 + $0x18] sm:$0xff]   ;;  %s250_s5 = smov [#allocation3]  }
   0x9   :  { %v222_v6 = vld [vmem:[%s307_s1 + $0x10] sm:$0xff]   ;;  %v223_v7 = vld [vmem:[%s307_s1 + $0x8] sm:$0xff]   ;;  %v224_v8 = vld [vmem:[%s307_s1] sm:$0xff]   ;;  %s162_s6 = sshll.u32 %s250_s5, 4  ;;  %s163_s6 = int_to_ptr.vmem [resolvable:$true] %s162_s6 }
   0xa   :  { %197 = vmatpush3.bf16.msra.mxu0 %v219_v3  ;;  %v225_v9 = vld [vmem:[%s306_s0] sm:$0xff]   ;;  %s226_s1 = scalar_lea.vmem %s163_s6, 256  ;;  %p231_p1 = scmp.lt.s32.totalorder %s163_s6, %s163_s6 }
   0xb   :  { %198 = vmatprep.subr.bf16.mxu0 %v248_v1  ;;  %v182_v10 = vld [vmem:[%s308_s2] ss:$0 sm:$0xff]  ;;  %p227_p0 = scmp.ne.s32.totalorder %s163_s6, %s226_s1  ;;  %p232_p2 = scmp.lt.s32.totalorder %s226_s1, %s226_s1 }
   0xd   :  { %p233_p3 = por %p232_p2, %p231_p1 }
   0xe   :  { %199 = vmatpush3.bf16.msra.mxu0 %v220_v4 }
   0xf   :  { %200 = vmatprep.subr.bf16.mxu0 %v248_v1  ;;  %p234_p4 = pnand %p233_p3, %p227_p0 }
  0x12   :  { %201 = vmatpush3.bf16.msra.mxu0 %v221_v5 }
  0x13   :  { %202 = vmatprep.subr.bf16.mxu0 %v248_v1 }
  0x16   :  { %203 = vmatpush3.bf16.msra.mxu0 %v222_v6 }
  0x17   :  { %204 = vmatprep.subr.bf16.mxu0 %v248_v1 }
  0x1a   :  { %205 = vmatpush3.bf16.msra.mxu0 %v223_v7 }
  0x1b   :  { %206 = vmatprep.subr.bf16.mxu0 %v248_v1 }
  0x1e   :  { %207 = vmatpush3.bf16.msra.mxu0 %v224_v8 }
  0x21   :  { %209 = vmatmul.mubr.bf16.vlgmr.msra.gmra.mxu0 %v225_v9 }
  0xe1   :  { %v130_v11 = vpop.f32.mrf.mxu0 }
  0xe2   :  { %v153_v12 = vadd.f32 %v182_v10, %v130_v11 }
  0xe3   :  { %v210_v13 = vpop.f32.mrf.mxu0 }
  0xe4   :  { %155 = vst [vmem:[#allocation3] sm:$0xff] %v153_v12 }
  0xe5   :  { %v133_v14 = vpop.f32.mrf.mxu0 }
  0xe6   :  { %v154_v15 = vadd.f32 %v182_v10, %v133_v14 }
  0xe7   :  { %v211_v16 = vpop.f32.mrf.mxu0 }
  0xe8   :  { %156 = vst [vmem:[#allocation3 + $0x8] sm:$0xff] %v154_v15 }
  0xe9   :  { %237 = shalt.err (!%p234_p4)
}
  0xea   :  { %s251_s0 = smov 128   ;;  %s252_s2 = smov 8  }
  0xeb   :  { %168 = dma.vmem_to_hbm [thread:$0]  %s163_s6, 256, %s309_s3, [#allocation4], %s251_s0, %s251_s0, %s252_s2  }
  0xec   :  { %246 = dma.done.wait [#allocation4], 256  }
  0xed   :  { %247 = vsyncadd [#allocation4], 4294967040 }
  0xee   :  { %172 = vsyncpa [#allocation4], 1 }

// kernel: poetry_lstm_forward.5
= control target key start
LH: loop header
LB: loop body
LE: loop exit
PB: predicated region body
PF: predicated region fallthrough
CT: control target
= control target key end

     0   :  { %s838_s12 = smov 0   ;;  %s840_s13 = smov 0   ;;  %s939_s0 = inlined_call_operand.vmem [shape: bf16[16,128], index: 0, kind: input, shape index: {}]   ;;  %s940_s1 = inlined_call_operand.vmem [shape: bf16[128,512], index: 1, kind: input, shape index: {}]   ;;  %s941_s2 = inlined_call_operand.vmem [shape: f32[1,512], index: 2, kind: input, shape index: {}]   ;;  %s942_s3 = inlined_call_operand.vmem [shape: f32[16,512], index: 3, kind: output, shape index: {}]  }
   0x1   :  { %s842_s14 = smov 0   ;;  %s844_s15 = smov 0  }
   0x2   :  { %s846_s16 = smov 0  }
   0x3 LB: > { %s28_s17 = sadd.s32 1, %s811_s15  ;;  %s675_s18 = sadd.s32 4294967295, %s815_s16   ;;  %s815_s16 = sphi %s846_s16, %s13_s16   ;;  %s811_s15 = sphi %s844_s15, %s947_s15   ;;  %s807_s14 = sphi %s842_s14, %s946_s14   ;;  %s803_s13 = sphi %s840_s13, %s945_s13   ;;  %s799_s12 = sphi %s838_s12, %s944_s12  }
   0x4   : > { %p30_p0 = scmp.ge.s32.totalorder %s28_s17, 2  ;;  %p76_p1 = scmp.ne.s32.totalorder %s803_s13, %s799_s12 }
   0x5   : > { %p77_p2 = scmp.eq.s32.totalorder %s815_s16, 0  ;;  %p134_p4 = scmp.eq.s32.totalorder %s675_s18, 1 }
   0x6   : > { %s949_s17 = smov (%p30_p0, %s28_s17), 0  ;;  %s69_s20 = sadd.s32 1, %s803_s13 }
   0x7   : > { %p78_p3 = por %p77_p2, %p76_p1  ;;  %s65_s19 = ssub.s32 %s811_s15, %s949_s17 }
   0x8   : > { %p67_p5 = scmp.eq.s32.totalorder %s65_s19, 0  ;;  %p873_p6 = por %p134_p4, %p76_p1 }
   0x9   : > { %p679_p7 = scmp.ge.s32.totalorder %s815_s16, 2 }
   0xa   : > { %s878_s22 = scalar_select %p67_p5, %s803_s13, %s69_s20  }
   0xb   : > { %168 = sbr.rel (%p679_p7) target bundleno = 28 (0x1c), region = 20 }
  0x10   : > { %171 = sbr.rel (!%p78_p3) target bundleno = 28 (0x1c), region = 24  ;;  %s173_s23 = sand.u32 (%p78_p3), 1, %s803_s13  }
  0x11   : > { %s709_s24 = sshll.u32 (%p78_p3), %s811_s15, 3  ;;  %s680_s25 = sshll.u32 (%p78_p3), %s173_s23, 7 }
  0x12   : > { %s886_s28 = scalar_lea.vmem (%p78_p3), %s940_s1, %s709_s24  ;;  %s175_s29 = scalar_lea.vmem (%p78_p3), [#allocation3], %s680_s25 }
  0x13   : > { %v240_v0 = vld [vmem:[%s886_s28] sm:$0xff] (%p78_p3)  ;;  %v242_v1 = vld [vmem:[%s886_s28 + $0x10] sm:$0xff] (%p78_p3) }
  0x14   : > { %v244_v2 = vld [vmem:[%s886_s28 + $0x20] sm:$0xff] (%p78_p3)  ;;  %241 = vst [vmem:[%s175_s29] sm:$0xff] (%p78_p3), %v240_v0  ;;  %243 = vst [vmem:[%s175_s29 + $0x8] sm:$0xff] (%p78_p3), %v242_v1  ;;  %v246_v3 = vld [vmem:[%s886_s28 + $0x30] sm:$0xff] (%p78_p3) }
  0x15   : > { %245 = vst [vmem:[%s175_s29 + $0x10] sm:$0xff] %v244_v2  ;;  %v248_v4 = vld [vmem:[%s886_s28 + $0x40] sm:$0xff]  ;;  %v250_v5 = vld [vmem:[%s886_s28 + $0x50] sm:$0xff]  ;;  %247 = vst [vmem:[%s175_s29 + $0x18] sm:$0xff] %v246_v3 }
  0x16   : > { %249 = vst [vmem:[%s175_s29 + $0x20] sm:$0xff] %v248_v4  ;;  %251 = vst [vmem:[%s175_s29 + $0x28] sm:$0xff] %v250_v5  ;;  %v252_v6 = vld [vmem:[%s886_s28 + $0x60] sm:$0xff]  ;;  %v254_v7 = vld [vmem:[%s886_s28 + $0x70] sm:$0xff] }
  0x17   : > { %v256_v8 = vld [vmem:[%s886_s28 + $0x80] sm:$0xff]  ;;  %253 = vst [vmem:[%s175_s29 + $0x30] sm:$0xff] %v252_v6  ;;  %255 = vst [vmem:[%s175_s29 + $0x38] sm:$0xff] %v254_v7  ;;  %v258_v9 = vld [vmem:[%s886_s28 + $0x90] sm:$0xff] }
  0x18   : > { %257 = vst [vmem:[%s175_s29 + $0x40] sm:$0xff] %v256_v8  ;;  %v260_v10 = vld [vmem:[%s886_s28 + $0xa0] sm:$0xff]  ;;  %v262_v11 = vld [vmem:[%s886_s28 + $0xb0] sm:$0xff]  ;;  %259 = vst [vmem:[%s175_s29 + $0x48] sm:$0xff] %v258_v9 }
  0x19   : > { %261 = vst [vmem:[%s175_s29 + $0x50] sm:$0xff] %v260_v10  ;;  %263 = vst [vmem:[%s175_s29 + $0x58] sm:$0xff] %v262_v11  ;;  %v264_v12 = vld [vmem:[%s886_s28 + $0xc0] sm:$0xff]  ;;  %v266_v13 = vld [vmem:[%s886_s28 + $0xd0] sm:$0xff] }
  0x1a   : > { %v268_v14 = vld [vmem:[%s886_s28 + $0xe0] sm:$0xff]  ;;  %265 = vst [vmem:[%s175_s29 + $0x60] sm:$0xff] %v264_v12  ;;  %267 = vst [vmem:[%s175_s29 + $0x68] sm:$0xff] %v266_v13  ;;  %v270_v15 = vld [vmem:[%s886_s28 + $0xf0] sm:$0xff] }
  0x1b   : > { %269 = vst [vmem:[%s175_s29 + $0x70] sm:$0xff] %v268_v14  ;;  %271 = vst [vmem:[%s175_s29 + $0x78] sm:$0xff] %v270_v15 }
  0x1c PF: > { %p683_p8 = scmp.ge.s32.totalorder %s815_s16, 1  ;;  %p284_p9 = scmp.lt.s32.totalorder %s815_s16, 3 }
  0x1e   : > { %p285_p10 = pnand %p683_p8, %p284_p9 }
  0x1f   : > { %s291_s30 = sand.u32 (!%p285_p10), 1, %s799_s12   ;;  %s686_s8 = sshll.u32 (!%p285_p10), %s807_s14, 1 }
  0x20   : > { %288 = sbr.rel (%p285_p10) target bundleno = 280 (0x118), region = 66  ;;  %s684_s4 = sshll.u32 (!%p285_p10), %s291_s30, 7 }
  0x21   : > { %s293_s5 = scalar_lea.vmem (!%p285_p10), [#allocation3], %s684_s4  ;;  %p337_p11 = scmp.lt.s32.totalorder (!%p285_p10), %s686_s8, 3 }
  0x22   : > { %s685_s18 = sshll.u32 (!%p285_p10), %s291_s30, 5 }
  0x23   : > { %s324_s19 = scalar_lea.vmem (!%p285_p10), [#allocation4], %s685_s18 }
  0x25   : > { %v817_v16 = vmov 0   ;;  %v752_v17 = vld [vmem:[%s293_s5 + $0x74] ss:$8 sps:$4 sm:$0xff]   ;;  %v754_v18 = vld [vmem:[%s293_s5 + $0x70] ss:$8 sps:$4 sm:$0xff]   ;;  %v776_v33 = vld [vmem:[%s939_s0] sm:$0xff]   ;;  %v520_v34 = vlaneseq }
  0x26   : > { %492 = vmatprep.mubr.bf16.mxu0 %v817_v16  ;;  %460 = vmatprep.subr.bf16.mxu0 %v752_v17  ;;  %v755_v19 = vld [vmem:[%s293_s5 + $0x64] ss:$8 sps:$4 sm:$0xff]   ;;  %v757_v20 = vld [vmem:[%s293_s5 + $0x60] ss:$8 sps:$4 sm:$0xff]   ;;  %v758_v21 = vld [vmem:[%s293_s5 + $0x54] ss:$8 sps:$4 sm:$0xff]  }
  0x27   : > { %461 = vmatpush1.bf16.msra.mxu0 %v754_v18  ;;  %v760_v22 = vld [vmem:[%s293_s5 + $0x50] ss:$8 sps:$4 sm:$0xff]   ;;  %v761_v23 = vld [vmem:[%s293_s5 + $0x44] ss:$8 sps:$4 sm:$0xff]   ;;  %v763_v24 = vld [vmem:[%s293_s5 + $0x40] ss:$8 sps:$4 sm:$0xff]  }
  0x28   : > { %462 = vmatprep.subr.bf16.mxu0 %v755_v19  ;;  %v764_v25 = vld [vmem:[%s293_s5 + $0x34] ss:$8 sps:$4 sm:$0xff]   ;;  %v766_v26 = vld [vmem:[%s293_s5 + $0x30] ss:$8 sps:$4 sm:$0xff]   ;;  %v767_v27 = vld [vmem:[%s293_s5 + $0x24] ss:$8 sps:$4 sm:$0xff]  }
  0x29   : > { %v769_v28 = vld [vmem:[%s293_s5 + $0x20] ss:$8 sps:$4 sm:$0xff]   ;;  %v770_v29 = vld [vmem:[%s293_s5 + $0x14] ss:$8 sps:$4 sm:$0xff]   ;;  %v772_v30 = vld [vmem:[%s293_s5 + $0x10] ss:$8 sps:$4 sm:$0xff]  }
  0x2a   : > { %v773_v31 = vld [vmem:[%s293_s5 + $0x4] ss:$8 sps:$4 sm:$0xff]   ;;  %v775_v32 = vld [vmem:[%s293_s5] ss:$8 sps:$4 sm:$0xff]   ;;  %s951_s8 = smov (!%p337_p11, %s686_s8), 3  ;;  %v521_v35 = vshrl.u32 %v520_v34, 7 }
  0x2b   : > { %463 = vmatpush1.bf16.msra.mxu0 %v757_v20  ;;  %s339_s11 = scalar_lea.vmem %s941_s2, %s951_s8  ;;  %s710_s12 = sshll.u32 (%p873_p6), %s807_s14, 4 }
  0x2c   : > { %464 = vmatprep.subr.bf16.mxu0 %v758_v21  ;;  %v522_v36 = vsub.s32 0, %v521_v35  ;;  %v518_v37 = vld [vmem:[%s339_s11] sm:$0x3]  ;;  %v526_v38 = vsub.s32 1, %v521_v35  ;;  %s550_s24 = scalar_lea.vmem (%p873_p6), %s942_s3, %s710_s12 }
  0x2e   : > { %v523_v39 = vrot.slane %v518_v37, %v522_v36  ;;  %v527_v40 = vrot.slane %v518_v37, %v526_v38 }
  0x2f   : > { %465 = vmatpush1.bf16.msra.mxu0 %v760_v22 }
  0x30   : > { %466 = vmatprep.subr.bf16.mxu0 %v761_v23 }
  0x33   : > { %467 = vmatpush1.bf16.msra.mxu0 %v763_v24 }
  0x34   : > { %468 = vmatprep.subr.bf16.mxu0 %v764_v25 }
  0x37   : > { %469 = vmatpush1.bf16.msra.mxu0 %v766_v26 }
  0x38   : > { %470 = vmatprep.subr.bf16.mxu0 %v767_v27 }
  0x3b   : > { %471 = vmatpush1.bf16.msra.mxu0 %v769_v28 }
  0x3c   : > { %472 = vmatprep.subr.bf16.mxu0 %v770_v29 }
  0x3f   : > { %473 = vmatpush1.bf16.msra.mxu0 %v772_v30 }
  0x40   : > { %474 = vmatprep.subr.bf16.mxu0 %v773_v31 }
  0x43   : > { %475 = vmatpush1.bf16.msra.mxu0 %v775_v32 }
  0x46   : > { %493 = vmatmul.mubr.bf16.vlgmr.msra.gmra.mxu0 %v776_v33 }
 0x106   : > { %v494_v41 = vpop.f32.mrf.mxu0 }
 0x107   : > { %v530_v42 = vadd.f32 %v523_v39, %v494_v41 }
 0x108   : > { %v496_v43 = vpop.f32.mrf.mxu0 }
 0x109   : > { %534 = vst [vmem:[%s324_s19] sm:$0xff] %v530_v42  ;;  %v531_v44 = vadd.f32 %v527_v40, %v496_v43 }
 0x10a   : > { %v498_v45 = vpop.f32.mrf.mxu0 }
 0x10b   : > { %535 = vst [vmem:[%s324_s19 + $0x8] sm:$0xff] %v531_v44  ;;  %v532_v46 = vadd.f32 %v523_v39, %v498_v45  ;;  %544 = sbr.rel (!%p873_p6) target bundleno = 280 (0x118), region = 82 }
 0x10c   : > { %v500_v47 = vpop.f32.mrf.mxu0 }
 0x10d   : > { %536 = vst [vmem:[%s324_s19 + $0x10] sm:$0xff] %v532_v46  ;;  %v533_v48 = vadd.f32 %v527_v40, %v500_v47 }
 0x10f   : > { %537 = vst [vmem:[%s324_s19 + $0x18] sm:$0xff] %v533_v48 }
 0x110   : > { %v563_v49 = vld [vmem:[%s324_s19] sm:$0xff] }
 0x111   : > { %564 = vst [vmem:[%s550_s24] sm:$0xff] %v563_v49 }
 0x112   : > { %v565_v50 = vld [vmem:[%s324_s19 + $0x8] sm:$0xff] }
 0x113   : > { %566 = vst [vmem:[%s550_s24 + $0x8] sm:$0xff] %v565_v50 }
 0x114   : > { %v567_v51 = vld [vmem:[%s324_s19 + $0x10] sm:$0xff] }
 0x115   : > { %568 = vst [vmem:[%s550_s24 + $0x20] sm:$0xff] %v567_v51 }
 0x116   : > { %v569_v52 = vld [vmem:[%s324_s19 + $0x18] sm:$0xff] }
 0x117   : > { %570 = vst [vmem:[%s550_s24 + $0x28] sm:$0xff] %v569_v52 }
 0x118 PF: > { %s13_s16 = sadd.s32 1, %s815_s16   ;;  %s944_s12 = smov %s803_s13 }
 0x119   : > { %p10_p12 = scmp.ge.s32.totalorder %s13_s16, 4   ;;  %s945_s13 = smov %s878_s22 }
 0x11a   : > { %s946_s14 = smov %s811_s15  ;;  %s947_s15 = smov %s949_s17 }
 0x11b   :  { %12 = sbr.rel (!%p10_p12) target bundleno = 3 (0x3), region = 142 }

// kernel: poetry_lstm_forward.6
= control target key start
LH: loop header
LB: loop body
LE: loop exit
PB: predicated region body
PF: predicated region fallthrough
CT: control target
= control target key end

     0   :  { %v1679_v1 = vmov 0   ;;  %v1680_v2 = vmov 0.0   ;;  %v1681_v36 = vmov 1983009808   ;;  %v308_v38 = vlaneseq  ;;  %s2320_s1 = inlined_call_operand.vmem [shape: bf16[128,512], index: 1, kind: input, shape index: {}]   ;;  %s2321_s0 = inlined_call_operand.vmem [shape: f32[8,2,512], index: 0, kind: input, shape index: {}]   ;;  %s2322_s2 = inlined_call_operand.vmem [shape: bf16[8,2,128], index: 2, kind: output, shape index: {0}]   ;;  %s2323_s4 = inlined_call_operand.vmem [shape: f32[2,128], index: 4, kind: output, shape index: {2}]   ;;  %s2324_s3 = inlined_call_operand.vmem [shape: f32[2,128], index: 3, kind: output, shape index: {1}]  }
   0x1   :  { %v1710_v0 = vld [vmem:[%s2320_s1 + $0xe4] ss:$16 sps:$4 sm:$0xff]   ;;  %249 = vmatprep.mubr.bf16.mxu0 %v1679_v1  ;;  %290 = vmatprep.mubr.bf16.mxu1 %v1679_v1  ;;  %19 = vst [vmem:[#allocation2] sm:$0x3] %v1680_v2  ;;  %20 = vst [vmem:[#allocation3] sm:$0x3] %v1680_v2  ;;  %v306_v37 = vunpack.c.l.s4 %v1681_v36 }
   0x2   :  { %v1717_v3 = vld [vmem:[%s2320_s1 + $0xec] ss:$16 sps:$4 sm:$0xff]   ;;  %217 = vmatprep.subr.bf16.mxu0 %v1710_v0  ;;  %v1723_v4 = vld [vmem:[%s2320_s1 + $0xe0] ss:$16 sps:$4 sm:$0xff]   ;;  %v1728_v5 = vld [vmem:[%s2320_s1 + $0xe8] ss:$16 sps:$4 sm:$0xff]  }
   0x3   :  { %258 = vmatprep.subr.bf16.mxu1 %v1717_v3  ;;  %v1734_v6 = vld [vmem:[%s2320_s1 + $0xc4] ss:$16 sps:$4 sm:$0xff]   ;;  %218 = vmatpush1.bf16.msra.mxu0 %v1723_v4  ;;  %v1741_v7 = vld [vmem:[%s2320_s1 + $0xcc] ss:$16 sps:$4 sm:$0xff]   ;;  %v1746_v8 = vld [vmem:[%s2320_s1 + $0xc0] ss:$16 sps:$4 sm:$0xff]   ;;  %v307_v39 = vunpack.c.0.s8 %v306_v37 }
   0x4   :  { %259 = vmatpush1.bf16.msra.mxu1 %v1728_v5  ;;  %219 = vmatprep.subr.bf16.mxu0 %v1734_v6  ;;  %v1752_v9 = vld [vmem:[%s2320_s1 + $0xc8] ss:$16 sps:$4 sm:$0xff]   ;;  %v1758_v10 = vld [vmem:[%s2320_s1 + $0xa4] ss:$16 sps:$4 sm:$0xff]   ;;  %v1763_v11 = vld [vmem:[%s2320_s1 + $0xac] ss:$16 sps:$4 sm:$0xff]  }
   0x5   :  { %260 = vmatprep.subr.bf16.mxu1 %v1741_v7  ;;  %v1768_v12 = vld [vmem:[%s2320_s1 + $0xa0] ss:$16 sps:$4 sm:$0xff]   ;;  %v1773_v13 = vld [vmem:[%s2320_s1 + $0xa8] ss:$16 sps:$4 sm:$0xff]   ;;  %v1780_v14 = vld [vmem:[%s2320_s1 + $0x84] ss:$16 sps:$4 sm:$0xff]  }
   0x6   :  { %v1787_v15 = vld [vmem:[%s2320_s1 + $0x8c] ss:$16 sps:$4 sm:$0xff]   ;;  %v1792_v16 = vld [vmem:[%s2320_s1 + $0x80] ss:$16 sps:$4 sm:$0xff]   ;;  %v1799_v17 = vld [vmem:[%s2320_s1 + $0x88] ss:$16 sps:$4 sm:$0xff]  }
   0x7   :  { %220 = vmatpush1.bf16.msra.mxu0 %v1746_v8  ;;  %v1804_v18 = vld [vmem:[%s2320_s1 + $0x64] ss:$16 sps:$4 sm:$0xff]   ;;  %v1811_v19 = vld [vmem:[%s2320_s1 + $0x6c] ss:$16 sps:$4 sm:$0xff]   ;;  %v1816_v20 = vld [vmem:[%s2320_s1 + $0x60] ss:$16 sps:$4 sm:$0xff]  }
   0x8   :  { %261 = vmatpush1.bf16.msra.mxu1 %v1752_v9  ;;  %221 = vmatprep.subr.bf16.mxu0 %v1758_v10  ;;  %v1821_v21 = vld [vmem:[%s2320_s1 + $0x68] ss:$16 sps:$4 sm:$0xff]   ;;  %v1828_v22 = vld [vmem:[%s2320_s1 + $0x44] ss:$16 sps:$4 sm:$0xff]   ;;  %v1835_v23 = vld [vmem:[%s2320_s1 + $0x4c] ss:$16 sps:$4 sm:$0xff]  }
   0x9   :  { %262 = vmatprep.subr.bf16.mxu1 %v1763_v11  ;;  %v1842_v24 = vld [vmem:[%s2320_s1 + $0x40] ss:$16 sps:$4 sm:$0xff]   ;;  %v1847_v25 = vld [vmem:[%s2320_s1 + $0x48] ss:$16 sps:$4 sm:$0xff]   ;;  %v1854_v26 = vld [vmem:[%s2320_s1 + $0x24] ss:$16 sps:$4 sm:$0xff]  }
   0xa   :  { %v1859_v27 = vld [vmem:[%s2320_s1 + $0x2c] ss:$16 sps:$4 sm:$0xff]   ;;  %v1866_v28 = vld [vmem:[%s2320_s1 + $0x20] ss:$16 sps:$4 sm:$0xff]   ;;  %v1871_v29 = vld [vmem:[%s2320_s1 + $0x28] ss:$16 sps:$4 sm:$0xff]  }
   0xb   :  { %222 = vmatpush1.bf16.msra.mxu0 %v1768_v12  ;;  %v1878_v30 = vld [vmem:[%s2320_s1 + $0x4] ss:$16 sps:$4 sm:$0xff]   ;;  %v1883_v31 = vld [vmem:[%s2320_s1 + $0xc] ss:$16 sps:$4 sm:$0xff]   ;;  %v1890_v32 = vld [vmem:[%s2320_s1] ss:$16 sps:$4 sm:$0xff]  }
   0xc   :  { %263 = vmatpush1.bf16.msra.mxu1 %v1773_v13  ;;  %223 = vmatprep.subr.bf16.mxu0 %v1780_v14  ;;  %v1895_v33 = vld [vmem:[%s2320_s1 + $0x8] ss:$16 sps:$4 sm:$0xff]   ;;  %v53_v34 = vld [vmem:[#allocation2] sm:$0x3]  ;;  %v309_v40 = vshrl.u32 %v308_v38, 7 }
   0xd   :  { %264 = vmatprep.subr.bf16.mxu1 %v1787_v15  ;;  %v56_v35 = vpack.c.bf16 %v53_v34, %v53_v34  ;;  %v55_v52 = vld [vmem:[%s2321_s0] sm:$0xff] }
   0xe   :  { %v1937_v43 = vsub.s32 %v307_v39, %v309_v40  ;;  %v54_v38 = vld [vmem:[#allocation3] sm:$0x3] }
   0xf   :  { %224 = vmatpush1.bf16.msra.mxu0 %v1792_v16 }
  0x10   :  { %265 = vmatpush1.bf16.msra.mxu1 %v1799_v17  ;;  %225 = vmatprep.subr.bf16.mxu0 %v1804_v18 }
  0x11   :  { %266 = vmatprep.subr.bf16.mxu1 %v1811_v19 }
  0x13   :  { %226 = vmatpush1.bf16.msra.mxu0 %v1816_v20 }
  0x14   :  { %267 = vmatpush1.bf16.msra.mxu1 %v1821_v21  ;;  %227 = vmatprep.subr.bf16.mxu0 %v1828_v22 }
  0x15   :  { %268 = vmatprep.subr.bf16.mxu1 %v1835_v23 }
  0x17   :  { %228 = vmatpush1.bf16.msra.mxu0 %v1842_v24 }
  0x18   :  { %269 = vmatpush1.bf16.msra.mxu1 %v1847_v25  ;;  %229 = vmatprep.subr.bf16.mxu0 %v1854_v26 }
  0x19   :  { %270 = vmatprep.subr.bf16.mxu1 %v1859_v27 }
  0x1b   :  { %230 = vmatpush1.bf16.msra.mxu0 %v1866_v28 }
  0x1c   :  { %271 = vmatpush1.bf16.msra.mxu1 %v1871_v29  ;;  %231 = vmatprep.subr.bf16.mxu0 %v1878_v30 }
  0x1d   :  { %272 = vmatprep.subr.bf16.mxu1 %v1883_v31 }
  0x1f   :  { %232 = vmatpush1.bf16.msra.mxu0 %v1890_v32 }
  0x20   :  { %273 = vmatpush1.bf16.msra.mxu1 %v1895_v33  ;;  %362 = vmatprep.subr.bf16.mxu0 %v1710_v0 }
  0x21   :  { %403 = vmatprep.subr.bf16.mxu1 %v1717_v3 }
  0x22   :  { %250 = vmatmul.mubr.bf16.vlgmr.msra.gmra.mxu0 %v56_v35 }
  0x23   :  { %291 = vmatmul.mubr.bf16.vlgmr.msra.gmra.mxu1 %v56_v35  ;;  %363 = vmatpush1.bf16.msra.mxu0 %v1723_v4 }
  0x24   :  { %404 = vmatpush1.bf16.msra.mxu1 %v1728_v5  ;;  %364 = vmatprep.subr.bf16.mxu0 %v1734_v6 }
  0x25   :  { %405 = vmatprep.subr.bf16.mxu1 %v1741_v7  ;;  %394 = vmatprep.mubr.bf16.mxu0 %v1679_v1 }
  0x26   :  { %435 = vmatprep.mubr.bf16.mxu1 %v1679_v1 }
  0x27   :  { %365 = vmatpush1.bf16.msra.mxu0 %v1746_v8 }
  0x28   :  { %406 = vmatpush1.bf16.msra.mxu1 %v1752_v9  ;;  %366 = vmatprep.subr.bf16.mxu0 %v1758_v10 }
  0x29   :  { %407 = vmatprep.subr.bf16.mxu1 %v1763_v11 }
  0x2b   :  { %367 = vmatpush1.bf16.msra.mxu0 %v1768_v12 }
  0x2c   :  { %408 = vmatpush1.bf16.msra.mxu1 %v1773_v13  ;;  %368 = vmatprep.subr.bf16.mxu0 %v1780_v14 }
  0x2d   :  { %409 = vmatprep.subr.bf16.mxu1 %v1787_v15 }
  0x2f   :  { %369 = vmatpush1.bf16.msra.mxu0 %v1792_v16 }
  0x30   :  { %410 = vmatpush1.bf16.msra.mxu1 %v1799_v17  ;;  %370 = vmatprep.subr.bf16.mxu0 %v1804_v18 }
  0x31   :  { %411 = vmatprep.subr.bf16.mxu1 %v1811_v19 }
  0x33   :  { %371 = vmatpush1.bf16.msra.mxu0 %v1816_v20 }
  0x34   :  { %412 = vmatpush1.bf16.msra.mxu1 %v1821_v21  ;;  %372 = vmatprep.subr.bf16.mxu0 %v1828_v22 }
  0x35   :  { %413 = vmatprep.subr.bf16.mxu1 %v1835_v23 }
  0x37   :  { %373 = vmatpush1.bf16.msra.mxu0 %v1842_v24 }
  0x38   :  { %414 = vmatpush1.bf16.msra.mxu1 %v1847_v25  ;;  %374 = vmatprep.subr.bf16.mxu0 %v1854_v26 }
  0x39   :  { %415 = vmatprep.subr.bf16.mxu1 %v1859_v27 }
  0x3b   :  { %375 = vmatpush1.bf16.msra.mxu0 %v1866_v28 }
  0x3c   :  { %416 = vmatpush1.bf16.msra.mxu1 %v1871_v29  ;;  %376 = vmatprep.subr.bf16.mxu0 %v1878_v30 }
  0x3d   :  { %417 = vmatprep.subr.bf16.mxu1 %v1883_v31 }
  0x3f   :  { %377 = vmatpush1.bf16.msra.mxu0 %v1890_v32 }
  0x40   :  { %418 = vmatpush1.bf16.msra.mxu1 %v1895_v33  ;;  %508 = vmatprep.subr.bf16.mxu0 %v1710_v0 }
  0x41   :  { %549 = vmatprep.subr.bf16.mxu1 %v1717_v3 }
  0xe2   :  { %v251_v41 = vpop.f32.mrf.mxu0 }
  0xe3   :  { %v292_v42 = vpop.f32.mrf.mxu1 }
  0xe4   :  { %v253_v44 = vpop.f32.mrf.mxu0 }
  0xe5   :  { %v294_v45 = vpop.f32.mrf.mxu1  ;;  %v303_v46 = vcombine.low %v251_v41, %v253_v44 }
  0xe6   :  { %v304_v47 = vcombine.low %v292_v42, %v294_v45  ;;  %v255_v48 = vpop.f32.mrf.mxu0 }
  0xe7   :  { %v296_v49 = vpop.f32.mrf.mxu1  ;;  %v311_v50 = vrot.slane %v303_v46, %v1937_v43 }
  0xe8   :  { %v318_v51 = vrot.slane %v304_v47, %v1937_v43  ;;  %v256_v53 = vpop.f32.mrf.mxu0 }
  0xe9   :  { %v297_v54 = vpop.f32.mrf.mxu1 }
  0xea   :  { %v319_v55 = vcombine.low %v311_v50, %v318_v51 }
  0xec   :  { %v321_v56 = vadd.f32 %v319_v55, %v55_v52 }
  0xee   :  { %v1430_v57 = vmul.f32 -1.442695, %v321_v56  ;;  %v329_v58 = vrot.slane %v321_v56, 2  ;;  %v340_v60 = vrot.slane %v321_v56, 6  ;;  %v337_v63 = vrot.slane %v321_v56, 4 }
  0xf0   :  { %1519 = vpow2.f32 %v1430_v57  ;;  %v1431_v59 = vmul.f32 -1.442695, %v329_v58  ;;  %v1432_v61 = vmul.f32 -1.442695, %v340_v60 }
  0xf2   :  { %1521 = vpow2.f32 %v1431_v59 }
  0xf3   :  { %1523 = vpow2.f32 %v1432_v61 }
  0xfd   :  { %v1520_v62 = vpop.eup %1519 }
  0xfe   :  { %v325_v2 = vadd.f32 1.0, %v1520_v62  ;;  %v1433_v62 = vld [vmem:[%s2321_s0 + $0x8] sm:$0xff] }
  0xff   :  { %v1522_v34 = vpop.eup %1521 }
 0x100   :  { %1525 = vrcp.f32 %v325_v2  ;;  %v334_v35 = vadd.f32 1.0, %v1522_v34  ;;  %v1524_v36 = vpop.eup %1523 }
 0x101   :  { %1527 = vtanh.f32 %v337_v63  ;;  %v345_v41 = vadd.f32 1.0, %v1524_v36 }
 0x102   :  { %1529 = vrcp.f32 %v334_v35 }
 0x103   :  { %1531 = vrcp.f32 %v345_v41 }
 0x10d   :  { %v1526_v37 = vpop.eup %1525 }
 0x10e   :  { %v1528_v39 = vpop.eup %1527 }
 0x10f   :  { %v1530_v40 = vpop.eup %1529  ;;  %v349_v44 = vmul.f32 %v1528_v39, %v1526_v37 }
 0x110   :  { %v348_v42 = vmul.f32 %v1530_v40, %v54_v38  ;;  %v1532_v46 = vpop.eup %1531 }
 0x112   :  { %v350_v45 = vadd.f32 %v349_v44, %v348_v42 }
 0x114   :  { %1533 = vtanh.f32 %v350_v45  ;;  %354 = vst [vmem:[#allocation3] sm:$0x3] %v350_v45 }
 0x121   :  { %v1534_v47 = vpop.eup %1533 }
 0x122   :  { %v352_v48 = vmul.f32 %v1534_v47, %v1532_v46 }
 0x124   :  { %353 = vst [vmem:[#allocation2] sm:$0x3] %v352_v48  ;;  %v355_v49 = vpack.c.bf16 %v352_v48, %v352_v48 }
 0x126   :  { %356 = vst [vmem:[%s2322_s2] sm:$0x1] %v355_v49 }
 0x12b   :  { %v357_v50 = vld [vmem:[#allocation2] sm:$0x3] }
 0x12c   :  { %v361_v51 = vpack.c.bf16 %v357_v50, %v357_v50 }
 0x12e   :  { %395 = vmatmul.mubr.bf16.vlgmr.msra.gmra.mxu0 %v361_v51  ;;  %436 = vmatmul.mubr.bf16.vlgmr.msra.gmra.mxu1 %v361_v51  ;;  %v358_v51 = vld [vmem:[#allocation3] sm:$0x3] }
 0x12f   :  { %509 = vmatpush1.bf16.msra.mxu0 %v1723_v4  ;;  %550 = vmatpush1.bf16.msra.mxu1 %v1728_v5 }
 0x130   :  { %510 = vmatprep.subr.bf16.mxu0 %v1734_v6  ;;  %551 = vmatprep.subr.bf16.mxu1 %v1741_v7 }
 0x131   :  { %540 = vmatprep.mubr.bf16.mxu0 %v1679_v1  ;;  %581 = vmatprep.mubr.bf16.mxu1 %v1679_v1 }
 0x133   :  { %511 = vmatpush1.bf16.msra.mxu0 %v1746_v8  ;;  %552 = vmatpush1.bf16.msra.mxu1 %v1752_v9 }
 0x134   :  { %512 = vmatprep.subr.bf16.mxu0 %v1758_v10  ;;  %553 = vmatprep.subr.bf16.mxu1 %v1763_v11 }
 0x137   :  { %513 = vmatpush1.bf16.msra.mxu0 %v1768_v12  ;;  %554 = vmatpush1.bf16.msra.mxu1 %v1773_v13 }
 0x138   :  { %514 = vmatprep.subr.bf16.mxu0 %v1780_v14  ;;  %555 = vmatprep.subr.bf16.mxu1 %v1787_v15 }
 0x13b   :  { %515 = vmatpush1.bf16.msra.mxu0 %v1792_v16  ;;  %556 = vmatpush1.bf16.msra.mxu1 %v1799_v17 }
 0x13c   :  { %516 = vmatprep.subr.bf16.mxu0 %v1804_v18  ;;  %557 = vmatprep.subr.bf16.mxu1 %v1811_v19 }
 0x13f   :  { %517 = vmatpush1.bf16.msra.mxu0 %v1816_v20  ;;  %558 = vmatpush1.bf16.msra.mxu1 %v1821_v21 }
 0x140   :  { %518 = vmatprep.subr.bf16.mxu0 %v1828_v22  ;;  %559 = vmatprep.subr.bf16.mxu1 %v1835_v23 }
 0x143   :  { %519 = vmatpush1.bf16.msra.mxu0 %v1842_v24  ;;  %560 = vmatpush1.bf16.msra.mxu1 %v1847_v25 }
 0x144   :  { %520 = vmatprep.subr.bf16.mxu0 %v1854_v26  ;;  %561 = vmatprep.subr.bf16.mxu1 %v1859_v27 }
 0x147   :  { %521 = vmatpush1.bf16.msra.mxu0 %v1866_v28  ;;  %562 = vmatpush1.bf16.msra.mxu1 %v1871_v29 }
 0x148   :  { %522 = vmatprep.subr.bf16.mxu0 %v1878_v30  ;;  %563 = vmatprep.subr.bf16.mxu1 %v1883_v31 }
 0x14b   :  { %523 = vmatpush1.bf16.msra.mxu0 %v1890_v32  ;;  %564 = vmatpush1.bf16.msra.mxu1 %v1895_v33 }
 0x14c   :  { %654 = vmatprep.subr.bf16.mxu0 %v1710_v0  ;;  %695 = vmatprep.subr.bf16.mxu1 %v1717_v3 }
 0x1ee   :  { %v396_v52 = vpop.f32.mrf.mxu0  ;;  %v437_v53 = vpop.f32.mrf.mxu1 }
 0x1f0   :  { %v398_v54 = vpop.f32.mrf.mxu0  ;;  %v439_v55 = vpop.f32.mrf.mxu1 }
 0x1f1   :  { %v448_v56 = vcombine.low %v396_v52, %v398_v54  ;;  %v449_v57 = vcombine.low %v437_v53, %v439_v55 }
 0x1f2   :  { %v400_v58 = vpop.f32.mrf.mxu0  ;;  %v441_v59 = vpop.f32.mrf.mxu1 }
 0x1f3   :  { %v456_v60 = vrot.slane %v448_v56, %v1937_v43  ;;  %v463_v61 = vrot.slane %v449_v57, %v1937_v43 }
 0x1f4   :  { %v401_v63 = vpop.f32.mrf.mxu0  ;;  %v442_v2 = vpop.f32.mrf.mxu1 }
 0x1f5   :  { %v464_v34 = vcombine.low %v456_v60, %v463_v61 }
 0x1f7   :  { %v466_v35 = vadd.f32 %v1433_v62, %v464_v34 }
 0x1f9   :  { %v1434_v36 = vmul.f32 -1.442695, %v466_v35  ;;  %v474_v37 = vrot.slane %v466_v35, 2  ;;  %v485_v39 = vrot.slane %v466_v35, 6  ;;  %v482_v42 = vrot.slane %v466_v35, 4 }
 0x1fb   :  { %1535 = vpow2.f32 %v1434_v36  ;;  %v1435_v38 = vmul.f32 -1.442695, %v474_v37  ;;  %v1436_v40 = vmul.f32 -1.442695, %v485_v39 }
 0x1fd   :  { %1537 = vpow2.f32 %v1435_v38 }
 0x1fe   :  { %1539 = vpow2.f32 %v1436_v40 }
 0x208   :  { %v1536_v41 = vpop.eup %1535 }
 0x209   :  { %v470_v44 = vadd.f32 1.0, %v1536_v41  ;;  %v1438_v41 = vld [vmem:[%s2321_s0 + $0x10] sm:$0xff] }
 0x20a   :  { %v1538_v45 = vpop.eup %1537 }
 0x20b   :  { %1541 = vrcp.f32 %v470_v44  ;;  %v479_v46 = vadd.f32 1.0, %v1538_v45  ;;  %v1540_v47 = vpop.eup %1539 }
 0x20c   :  { %1543 = vtanh.f32 %v482_v42  ;;  %v490_v52 = vadd.f32 1.0, %v1540_v47 }
 0x20d   :  { %1545 = vrcp.f32 %v479_v46 }
 0x20e   :  { %1547 = vrcp.f32 %v490_v52 }
 0x218   :  { %v1542_v48 = vpop.eup %1541 }
 0x219   :  { %v1544_v49 = vpop.eup %1543 }
 0x21a   :  { %v1546_v50 = vpop.eup %1545  ;;  %v494_v54 = vmul.f32 %v1544_v49, %v1542_v48 }
 0x21b   :  { %v493_v53 = vmul.f32 %v1546_v50, %v358_v51  ;;  %v1548_v56 = vpop.eup %1547 }
 0x21d   :  { %v495_v55 = vadd.f32 %v494_v54, %v493_v53 }
 0x21f   :  { %1549 = vtanh.f32 %v495_v55  ;;  %499 = vst [vmem:[#allocation3] sm:$0x3] %v495_v55 }
 0x22c   :  { %v1550_v57 = vpop.eup %1549 }
 0x22d   :  { %v497_v58 = vmul.f32 %v1550_v57, %v1548_v56 }
 0x22f   :  { %498 = vst [vmem:[#allocation2] sm:$0x3] %v497_v58  ;;  %v500_v59 = vpack.c.bf16 %v497_v58, %v497_v58 }
 0x231   :  { %1437 = vst [vmem:[%s2322_s2 + $0x1] sm:$0x1] %v500_v59 }
 0x236   :  { %v503_v60 = vld [vmem:[#allocation2] sm:$0x3] }
 0x237   :  { %v507_v61 = vpack.c.bf16 %v503_v60, %v503_v60 }
 0x239   :  { %541 = vmatmul.mubr.bf16.vlgmr.msra.gmra.mxu0 %v507_v61  ;;  %582 = vmatmul.mubr.bf16.vlgmr.msra.gmra.mxu1 %v507_v61  ;;  %v504_v61 = vld [vmem:[#allocation3] sm:$0x3] }
 0x23a   :  { %655 = vmatpush1.bf16.msra.mxu0 %v1723_v4  ;;  %696 = vmatpush1.bf16.msra.mxu1 %v1728_v5 }
 0x23b   :  { %656 = vmatprep.subr.bf16.mxu0 %v1734_v6  ;;  %697 = vmatprep.subr.bf16.mxu1 %v1741_v7 }
 0x23c   :  { %686 = vmatprep.mubr.bf16.mxu0 %v1679_v1  ;;  %727 = vmatprep.mubr.bf16.mxu1 %v1679_v1 }
 0x23e   :  { %657 = vmatpush1.bf16.msra.mxu0 %v1746_v8  ;;  %698 = vmatpush1.bf16.msra.mxu1 %v1752_v9 }
 0x23f   :  { %658 = vmatprep.subr.bf16.mxu0 %v1758_v10  ;;  %699 = vmatprep.subr.bf16.mxu1 %v1763_v11 }
 0x242   :  { %659 = vmatpush1.bf16.msra.mxu0 %v1768_v12  ;;  %700 = vmatpush1.bf16.msra.mxu1 %v1773_v13 }
 0x243   :  { %660 = vmatprep.subr.bf16.mxu0 %v1780_v14  ;;  %701 = vmatprep.subr.bf16.mxu1 %v1787_v15 }
 0x246   :  { %661 = vmatpush1.bf16.msra.mxu0 %v1792_v16  ;;  %702 = vmatpush1.bf16.msra.mxu1 %v1799_v17 }
 0x247   :  { %662 = vmatprep.subr.bf16.mxu0 %v1804_v18  ;;  %703 = vmatprep.subr.bf16.mxu1 %v1811_v19 }
 0x24a   :  { %663 = vmatpush1.bf16.msra.mxu0 %v1816_v20  ;;  %704 = vmatpush1.bf16.msra.mxu1 %v1821_v21 }
 0x24b   :  { %664 = vmatprep.subr.bf16.mxu0 %v1828_v22  ;;  %705 = vmatprep.subr.bf16.mxu1 %v1835_v23 }
 0x24e   :  { %665 = vmatpush1.bf16.msra.mxu0 %v1842_v24  ;;  %706 = vmatpush1.bf16.msra.mxu1 %v1847_v25 }
 0x24f   :  { %666 = vmatprep.subr.bf16.mxu0 %v1854_v26  ;;  %707 = vmatprep.subr.bf16.mxu1 %v1859_v27 }
 0x252   :  { %667 = vmatpush1.bf16.msra.mxu0 %v1866_v28  ;;  %708 = vmatpush1.bf16.msra.mxu1 %v1871_v29 }
 0x253   :  { %668 = vmatprep.subr.bf16.mxu0 %v1878_v30  ;;  %709 = vmatprep.subr.bf16.mxu1 %v1883_v31 }
 0x256   :  { %669 = vmatpush1.bf16.msra.mxu0 %v1890_v32  ;;  %710 = vmatpush1.bf16.msra.mxu1 %v1895_v33 }
 0x257   :  { %800 = vmatprep.subr.bf16.mxu0 %v1710_v0  ;;  %841 = vmatprep.subr.bf16.mxu1 %v1717_v3 }
 0x2f9   :  { %v542_v62 = vpop.f32.mrf.mxu0  ;;  %v583_v63 = vpop.f32.mrf.mxu1 }
 0x2fb   :  { %v544_v2 = vpop.f32.mrf.mxu0  ;;  %v585_v34 = vpop.f32.mrf.mxu1 }
 0x2fc   :  { %v594_v35 = vcombine.low %v542_v62, %v544_v2  ;;  %v595_v36 = vcombine.low %v583_v63, %v585_v34 }
 0x2fd   :  { %v546_v37 = vpop.f32.mrf.mxu0  ;;  %v587_v38 = vpop.f32.mrf.mxu1 }
 0x2fe   :  { %v602_v39 = vrot.slane %v594_v35, %v1937_v43  ;;  %v609_v40 = vrot.slane %v595_v36, %v1937_v43 }
 0x2ff   :  { %v547_v42 = vpop.f32.mrf.mxu0  ;;  %v588_v44 = vpop.f32.mrf.mxu1 }
 0x300   :  { %v610_v45 = vcombine.low %v602_v39, %v609_v40 }
 0x302   :  { %v612_v46 = vadd.f32 %v1438_v41, %v610_v45 }
 0x304   :  { %v1439_v47 = vmul.f32 -1.442695, %v612_v46  ;;  %v620_v48 = vrot.slane %v612_v46, 2  ;;  %v631_v50 = vrot.slane %v612_v46, 6  ;;  %v628_v53 = vrot.slane %v612_v46, 4 }
 0x306   :  { %1551 = vpow2.f32 %v1439_v47  ;;  %v1440_v49 = vmul.f32 -1.442695, %v620_v48  ;;  %v1441_v51 = vmul.f32 -1.442695, %v631_v50 }
 0x308   :  { %1553 = vpow2.f32 %v1440_v49 }
 0x309   :  { %1555 = vpow2.f32 %v1441_v51 }
 0x313   :  { %v1552_v52 = vpop.eup %1551 }
 0x314   :  { %v616_v54 = vadd.f32 1.0, %v1552_v52  ;;  %v1443_v52 = vld [vmem:[%s2321_s0 + $0x18] sm:$0xff] }
 0x315   :  { %v1554_v55 = vpop.eup %1553 }
 0x316   :  { %1557 = vrcp.f32 %v616_v54  ;;  %v625_v56 = vadd.f32 1.0, %v1554_v55  ;;  %v1556_v57 = vpop.eup %1555 }
 0x317   :  { %1559 = vtanh.f32 %v628_v53  ;;  %v636_v62 = vadd.f32 1.0, %v1556_v57 }
 0x318   :  { %1561 = vrcp.f32 %v625_v56 }
 0x319   :  { %1563 = vrcp.f32 %v636_v62 }
 0x323   :  { %v1558_v58 = vpop.eup %1557 }
 0x324   :  { %v1560_v59 = vpop.eup %1559 }
 0x325   :  { %v1562_v60 = vpop.eup %1561  ;;  %v640_v2 = vmul.f32 %v1560_v59, %v1558_v58 }
 0x326   :  { %v639_v63 = vmul.f32 %v1562_v60, %v504_v61  ;;  %v1564_v35 = vpop.eup %1563 }
 0x328   :  { %v641_v34 = vadd.f32 %v640_v2, %v639_v63 }
 0x32a   :  { %1565 = vtanh.f32 %v641_v34  ;;  %645 = vst [vmem:[#allocation3] sm:$0x3] %v641_v34 }
 0x337   :  { %v1566_v36 = vpop.eup %1565 }
 0x338   :  { %v643_v37 = vmul.f32 %v1566_v36, %v1564_v35 }
 0x33a   :  { %644 = vst [vmem:[#allocation2] sm:$0x3] %v643_v37  ;;  %v646_v38 = vpack.c.bf16 %v643_v37, %v643_v37 }
 0x33c   :  { %1442 = vst [vmem:[%s2322_s2 + $0x2] sm:$0x1] %v646_v38 }
 0x341   :  { %v649_v39 = vld [vmem:[#allocation2] sm:$0x3] }
 0x342   :  { %v653_v40 = vpack.c.bf16 %v649_v39, %v649_v39 }
 0x344   :  { %687 = vmatmul.mubr.bf16.vlgmr.msra.gmra.mxu0 %v653_v40  ;;  %728 = vmatmul.mubr.bf16.vlgmr.msra.gmra.mxu1 %v653_v40  ;;  %v650_v40 = vld [vmem:[#allocation3] sm:$0x3] }
 0x345   :  { %801 = vmatpush1.bf16.msra.mxu0 %v1723_v4  ;;  %842 = vmatpush1.bf16.msra.mxu1 %v1728_v5 }
 0x346   :  { %802 = vmatprep.subr.bf16.mxu0 %v1734_v6  ;;  %843 = vmatprep.subr.bf16.mxu1 %v1741_v7 }
 0x347   :  { %832 = vmatprep.mubr.bf16.mxu0 %v1679_v1  ;;  %873 = vmatprep.mubr.bf16.mxu1 %v1679_v1 }
 0x349   :  { %803 = vmatpush1.bf16.msra.mxu0 %v1746_v8  ;;  %844 = vmatpush1.bf16.msra.mxu1 %v1752_v9 }
 0x34a   :  { %804 = vmatprep.subr.bf16.mxu0 %v1758_v10  ;;  %845 = vmatprep.subr.bf16.mxu1 %v1763_v11 }
 0x34d   :  { %805 = vmatpush1.bf16.msra.mxu0 %v1768_v12  ;;  %846 = vmatpush1.bf16.msra.mxu1 %v1773_v13 }
 0x34e   :  { %806 = vmatprep.subr.bf16.mxu0 %v1780_v14  ;;  %847 = vmatprep.subr.bf16.mxu1 %v1787_v15 }
 0x351   :  { %807 = vmatpush1.bf16.msra.mxu0 %v1792_v16  ;;  %848 = vmatpush1.bf16.msra.mxu1 %v1799_v17 }
 0x352   :  { %808 = vmatprep.subr.bf16.mxu0 %v1804_v18  ;;  %849 = vmatprep.subr.bf16.mxu1 %v1811_v19 }
 0x355   :  { %809 = vmatpush1.bf16.msra.mxu0 %v1816_v20  ;;  %850 = vmatpush1.bf16.msra.mxu1 %v1821_v21 }
 0x356   :  { %810 = vmatprep.subr.bf16.mxu0 %v1828_v22  ;;  %851 = vmatprep.subr.bf16.mxu1 %v1835_v23 }
 0x359   :  { %811 = vmatpush1.bf16.msra.mxu0 %v1842_v24  ;;  %852 = vmatpush1.bf16.msra.mxu1 %v1847_v25 }
 0x35a   :  { %812 = vmatprep.subr.bf16.mxu0 %v1854_v26  ;;  %853 = vmatprep.subr.bf16.mxu1 %v1859_v27 }
 0x35d   :  { %813 = vmatpush1.bf16.msra.mxu0 %v1866_v28  ;;  %854 = vmatpush1.bf16.msra.mxu1 %v1871_v29 }
 0x35e   :  { %814 = vmatprep.subr.bf16.mxu0 %v1878_v30  ;;  %855 = vmatprep.subr.bf16.mxu1 %v1883_v31 }
 0x361   :  { %815 = vmatpush1.bf16.msra.mxu0 %v1890_v32  ;;  %856 = vmatpush1.bf16.msra.mxu1 %v1895_v33 }
 0x362   :  { %946 = vmatprep.subr.bf16.mxu0 %v1710_v0  ;;  %987 = vmatprep.subr.bf16.mxu1 %v1717_v3 }
 0x404   :  { %v688_v41 = vpop.f32.mrf.mxu0  ;;  %v729_v42 = vpop.f32.mrf.mxu1 }
 0x406   :  { %v690_v44 = vpop.f32.mrf.mxu0  ;;  %v731_v45 = vpop.f32.mrf.mxu1 }
 0x407   :  { %v740_v46 = vcombine.low %v688_v41, %v690_v44  ;;  %v741_v47 = vcombine.low %v729_v42, %v731_v45 }
 0x408   :  { %v692_v48 = vpop.f32.mrf.mxu0  ;;  %v733_v49 = vpop.f32.mrf.mxu1 }
 0x409   :  { %v748_v50 = vrot.slane %v740_v46, %v1937_v43  ;;  %v755_v51 = vrot.slane %v741_v47, %v1937_v43 }
 0x40a   :  { %v693_v53 = vpop.f32.mrf.mxu0  ;;  %v734_v54 = vpop.f32.mrf.mxu1 }
 0x40b   :  { %v756_v55 = vcombine.low %v748_v50, %v755_v51 }
 0x40d   :  { %v758_v56 = vadd.f32 %v1443_v52, %v756_v55 }
 0x40f   :  { %v1444_v57 = vmul.f32 -1.442695, %v758_v56  ;;  %v766_v58 = vrot.slane %v758_v56, 2  ;;  %v777_v60 = vrot.slane %v758_v56, 6  ;;  %v774_v63 = vrot.slane %v758_v56, 4 }
 0x411   :  { %1567 = vpow2.f32 %v1444_v57  ;;  %v1445_v59 = vmul.f32 -1.442695, %v766_v58  ;;  %v1446_v61 = vmul.f32 -1.442695, %v777_v60 }
 0x413   :  { %1569 = vpow2.f32 %v1445_v59 }
 0x414   :  { %1571 = vpow2.f32 %v1446_v61 }
 0x41e   :  { %v1568_v62 = vpop.eup %1567 }
 0x41f   :  { %v762_v2 = vadd.f32 1.0, %v1568_v62 }
 0x420   :  { %v1570_v34 = vpop.eup %1569 }
 0x421   :  { %1573 = vrcp.f32 %v762_v2  ;;  %v771_v35 = vadd.f32 1.0, %v1570_v34  ;;  %v1572_v36 = vpop.eup %1571 }
 0x422   :  { %1575 = vtanh.f32 %v774_v63  ;;  %v782_v41 = vadd.f32 1.0, %v1572_v36 }
 0x423   :  { %1577 = vrcp.f32 %v771_v35 }
 0x424   :  { %1579 = vrcp.f32 %v782_v41 }
 0x42e   :  { %v1574_v37 = vpop.eup %1573 }
 0x42f   :  { %v1576_v38 = vpop.eup %1575 }
 0x430   :  { %v1578_v39 = vpop.eup %1577  ;;  %v786_v44 = vmul.f32 %v1576_v38, %v1574_v37 }
 0x431   :  { %v785_v42 = vmul.f32 %v1578_v39, %v650_v40  ;;  %v1580_v46 = vpop.eup %1579 }
 0x433   :  { %v787_v45 = vadd.f32 %v786_v44, %v785_v42 }
 0x435   :  { %1581 = vtanh.f32 %v787_v45  ;;  %791 = vst [vmem:[#allocation3] sm:$0x3] %v787_v45  ;;  %v2118_v45 = vld [vmem:[%s2320_s1 + $0xe0] ss:$16 sps:$4 sm:$0xff]  }
 0x43c   :  { %v796_v2 = vld [vmem:[#allocation3] sm:$0x3] }
 0x442   :  { %v1582_v47 = vpop.eup %1581 }
 0x443   :  { %v789_v48 = vmul.f32 %v1582_v47, %v1580_v46  ;;  %v2124_v46 = vld [vmem:[%s2320_s1 + $0xe8] ss:$16 sps:$4 sm:$0xff]   ;;  %v2130_v47 = vld [vmem:[%s2320_s1 + $0xc4] ss:$16 sps:$4 sm:$0xff]  }
 0x445   :  { %v792_v49 = vpack.c.bf16 %v789_v48, %v789_v48  ;;  %790 = vst [vmem:[#allocation2] sm:$0x3] %v789_v48  ;;  %v2136_v48 = vld [vmem:[%s2320_s1 + $0xcc] ss:$16 sps:$4 sm:$0xff]  }
 0x447   :  { %1447 = vst [vmem:[%s2322_s2 + $0x3] sm:$0x1] %v792_v49  ;;  %v2144_v49 = vld [vmem:[%s2320_s1 + $0xc0] ss:$16 sps:$4 sm:$0xff]  }
 0x44c   :  { %v795_v50 = vld [vmem:[#allocation2] sm:$0x3] }
 0x44d   :  { %v799_v51 = vpack.c.bf16 %v795_v50, %v795_v50  ;;  %v2150_v50 = vld [vmem:[%s2320_s1 + $0xc8] ss:$16 sps:$4 sm:$0xff]  }
 0x44f   :  { %833 = vmatmul.mubr.bf16.vlgmr.msra.gmra.mxu0 %v799_v51  ;;  %874 = vmatmul.mubr.bf16.vlgmr.msra.gmra.mxu1 %v799_v51  ;;  %v2156_v51 = vld [vmem:[%s2320_s1 + $0xa4] ss:$16 sps:$4 sm:$0xff]  }
 0x450   :  { %947 = vmatpush1.bf16.msra.mxu0 %v1723_v4  ;;  %988 = vmatpush1.bf16.msra.mxu1 %v1728_v5 }
 0x451   :  { %948 = vmatprep.subr.bf16.mxu0 %v1734_v6  ;;  %989 = vmatprep.subr.bf16.mxu1 %v1741_v7 }
 0x452   :  { %978 = vmatprep.mubr.bf16.mxu0 %v1679_v1  ;;  %1019 = vmatprep.mubr.bf16.mxu1 %v1679_v1 }
 0x454   :  { %949 = vmatpush1.bf16.msra.mxu0 %v1746_v8  ;;  %990 = vmatpush1.bf16.msra.mxu1 %v1752_v9 }
 0x455   :  { %950 = vmatprep.subr.bf16.mxu0 %v1758_v10  ;;  %991 = vmatprep.subr.bf16.mxu1 %v1763_v11 }
 0x458   :  { %951 = vmatpush1.bf16.msra.mxu0 %v1768_v12  ;;  %992 = vmatpush1.bf16.msra.mxu1 %v1773_v13 }
 0x459   :  { %952 = vmatprep.subr.bf16.mxu0 %v1780_v14  ;;  %993 = vmatprep.subr.bf16.mxu1 %v1787_v15  ;;  %v1448_v14 = vld [vmem:[%s2321_s0 + $0x20] sm:$0xff] }
 0x45c   :  { %953 = vmatpush1.bf16.msra.mxu0 %v1792_v16  ;;  %994 = vmatpush1.bf16.msra.mxu1 %v1799_v17 }
 0x45d   :  { %954 = vmatprep.subr.bf16.mxu0 %v1804_v18  ;;  %995 = vmatprep.subr.bf16.mxu1 %v1811_v19 }
 0x460   :  { %955 = vmatpush1.bf16.msra.mxu0 %v1816_v20  ;;  %996 = vmatpush1.bf16.msra.mxu1 %v1821_v21 }
 0x461   :  { %956 = vmatprep.subr.bf16.mxu0 %v1828_v22  ;;  %997 = vmatprep.subr.bf16.mxu1 %v1835_v23 }
 0x464   :  { %957 = vmatpush1.bf16.msra.mxu0 %v1842_v24  ;;  %998 = vmatpush1.bf16.msra.mxu1 %v1847_v25 }
 0x465   :  { %958 = vmatprep.subr.bf16.mxu0 %v1854_v26  ;;  %999 = vmatprep.subr.bf16.mxu1 %v1859_v27 }
 0x468   :  { %959 = vmatpush1.bf16.msra.mxu0 %v1866_v28  ;;  %1000 = vmatpush1.bf16.msra.mxu1 %v1871_v29 }
 0x469   :  { %960 = vmatprep.subr.bf16.mxu0 %v1878_v30  ;;  %1001 = vmatprep.subr.bf16.mxu1 %v1883_v31 }
 0x46c   :  { %961 = vmatpush1.bf16.msra.mxu0 %v1890_v32  ;;  %1002 = vmatpush1.bf16.msra.mxu1 %v1895_v33 }
 0x46d   :  { %1092 = vmatprep.subr.bf16.mxu0 %v1710_v0  ;;  %1133 = vmatprep.subr.bf16.mxu1 %v1717_v3 }
 0x50f   :  { %v834_v4 = vpop.f32.mrf.mxu0  ;;  %v875_v5 = vpop.f32.mrf.mxu1 }
 0x511   :  { %v836_v6 = vpop.f32.mrf.mxu0  ;;  %v877_v7 = vpop.f32.mrf.mxu1 }
 0x512   :  { %v886_v8 = vcombine.low %v834_v4, %v836_v6  ;;  %v887_v9 = vcombine.low %v875_v5, %v877_v7  ;;  %v2162_v4 = vld [vmem:[%s2320_s1 + $0xac] ss:$16 sps:$4 sm:$0xff]   ;;  %v2168_v5 = vld [vmem:[%s2320_s1 + $0xa0] ss:$16 sps:$4 sm:$0xff]   ;;  %v2174_v6 = vld [vmem:[%s2320_s1 + $0xa8] ss:$16 sps:$4 sm:$0xff]  }
 0x513   :  { %v838_v10 = vpop.f32.mrf.mxu0  ;;  %v879_v11 = vpop.f32.mrf.mxu1  ;;  %v2180_v7 = vld [vmem:[%s2320_s1 + $0x84] ss:$16 sps:$4 sm:$0xff]  }
 0x514   :  { %v894_v12 = vrot.slane %v886_v8, %v1937_v43  ;;  %v901_v13 = vrot.slane %v887_v9, %v1937_v43  ;;  %v2186_v8 = vld [vmem:[%s2320_s1 + $0x8c] ss:$16 sps:$4 sm:$0xff]   ;;  %v2192_v9 = vld [vmem:[%s2320_s1 + $0x80] ss:$16 sps:$4 sm:$0xff]   ;;  %v2198_v10 = vld [vmem:[%s2320_s1 + $0x88] ss:$16 sps:$4 sm:$0xff]  }
 0x515   :  { %v839_v15 = vpop.f32.mrf.mxu0  ;;  %v880_v0 = vpop.f32.mrf.mxu1  ;;  %v2204_v11 = vld [vmem:[%s2320_s1 + $0x64] ss:$16 sps:$4 sm:$0xff]  }
 0x516   :  { %v902_v16 = vcombine.low %v894_v12, %v901_v13 }
 0x518   :  { %v904_v3 = vadd.f32 %v1448_v14, %v902_v16 }
 0x51a   :  { %v1449_v17 = vmul.f32 -1.442695, %v904_v3  ;;  %v912_v18 = vrot.slane %v904_v3, 2  ;;  %v923_v53 = vrot.slane %v904_v3, 6  ;;  %v920_v56 = vrot.slane %v904_v3, 4 }
 0x51c   :  { %1583 = vpow2.f32 %v1449_v17  ;;  %v1450_v52 = vmul.f32 -1.442695, %v912_v18  ;;  %v1451_v54 = vmul.f32 -1.442695, %v923_v53 }
 0x51e   :  { %1585 = vpow2.f32 %v1450_v52 }
 0x51f   :  { %1587 = vpow2.f32 %v1451_v54 }
 0x529   :  { %v1584_v55 = vpop.eup %1583 }
 0x52a   :  { %v908_v57 = vadd.f32 1.0, %v1584_v55 }
 0x52b   :  { %v1586_v58 = vpop.eup %1585 }
 0x52c   :  { %1589 = vrcp.f32 %v908_v57  ;;  %v917_v59 = vadd.f32 1.0, %v1586_v58  ;;  %v1588_v60 = vpop.eup %1587 }
 0x52d   :  { %1591 = vtanh.f32 %v920_v56  ;;  %v928_v34 = vadd.f32 1.0, %v1588_v60 }
 0x52e   :  { %1593 = vrcp.f32 %v917_v59 }
 0x52f   :  { %1595 = vrcp.f32 %v928_v34 }
 0x539   :  { %v1590_v61 = vpop.eup %1589 }
 0x53a   :  { %v1592_v62 = vpop.eup %1591 }
 0x53b   :  { %v1594_v63 = vpop.eup %1593  ;;  %v932_v36 = vmul.f32 %v1592_v62, %v1590_v61 }
 0x53c   :  { %v931_v35 = vmul.f32 %v1594_v63, %v796_v2  ;;  %v1596_v38 = vpop.eup %1595 }
 0x53e   :  { %v933_v37 = vadd.f32 %v932_v36, %v931_v35 }
 0x540   :  { %1597 = vtanh.f32 %v933_v37  ;;  %937 = vst [vmem:[#allocation3] sm:$0x3] %v933_v37 }
 0x547   :  { %v942_v59 = vld [vmem:[#allocation3] sm:$0x3] }
 0x54d   :  { %v1598_v39 = vpop.eup %1597 }
 0x54e   :  { %v935_v40 = vmul.f32 %v1598_v39, %v1596_v38  ;;  %v1665_v39 = vld [vmem:[%s2320_s1 + $0x60] ss:$16 sps:$4 sm:$0xff]  }
 0x550   :  { %v938_v41 = vpack.c.bf16 %v935_v40, %v935_v40  ;;  %936 = vst [vmem:[#allocation2] sm:$0x3] %v935_v40  ;;  %v1666_v40 = vld [vmem:[%s2320_s1 + $0x68] ss:$16 sps:$4 sm:$0xff]  }
 0x552   :  { %1452 = vst [vmem:[%s2322_s2 + $0x4] sm:$0x1] %v938_v41  ;;  %v1667_v41 = vld [vmem:[%s2320_s1 + $0x44] ss:$16 sps:$4 sm:$0xff]  }
 0x557   :  { %v941_v42 = vld [vmem:[#allocation2] sm:$0x3] }
 0x558   :  { %v945_v44 = vpack.c.bf16 %v941_v42, %v941_v42  ;;  %v1668_v42 = vld [vmem:[%s2320_s1 + $0x4c] ss:$16 sps:$4 sm:$0xff]  }
 0x55a   :  { %979 = vmatmul.mubr.bf16.vlgmr.msra.gmra.mxu0 %v945_v44  ;;  %1020 = vmatmul.mubr.bf16.vlgmr.msra.gmra.mxu1 %v945_v44  ;;  %v1669_v44 = vld [vmem:[%s2320_s1 + $0x40] ss:$16 sps:$4 sm:$0xff]  }
 0x55b   :  { %1093 = vmatpush1.bf16.msra.mxu0 %v2118_v45  ;;  %1134 = vmatpush1.bf16.msra.mxu1 %v2124_v46 }
 0x55c   :  { %1094 = vmatprep.subr.bf16.mxu0 %v2130_v47  ;;  %1135 = vmatprep.subr.bf16.mxu1 %v2136_v48 }
 0x55d   :  { %1124 = vmatprep.mubr.bf16.mxu0 %v1679_v1  ;;  %1165 = vmatprep.mubr.bf16.mxu1 %v1679_v1 }
 0x55f   :  { %1095 = vmatpush1.bf16.msra.mxu0 %v2144_v49  ;;  %1136 = vmatpush1.bf16.msra.mxu1 %v2150_v50 }
 0x560   :  { %1096 = vmatprep.subr.bf16.mxu0 %v2156_v51  ;;  %1137 = vmatprep.subr.bf16.mxu1 %v2162_v4 }
 0x563   :  { %1097 = vmatpush1.bf16.msra.mxu0 %v2168_v5  ;;  %1138 = vmatpush1.bf16.msra.mxu1 %v2174_v6 }
 0x564   :  { %1098 = vmatprep.subr.bf16.mxu0 %v2180_v7  ;;  %1139 = vmatprep.subr.bf16.mxu1 %v2186_v8 }
 0x567   :  { %1099 = vmatpush1.bf16.msra.mxu0 %v2192_v9  ;;  %1140 = vmatpush1.bf16.msra.mxu1 %v2198_v10 }
 0x568   :  { %1100 = vmatprep.subr.bf16.mxu0 %v2204_v11  ;;  %1141 = vmatprep.subr.bf16.mxu1 %v1811_v19  ;;  %v1662_v19 = vld [vmem:[%s2320_s1 + $0xe4] ss:$16 sps:$4 sm:$0xff]  }
 0x56b   :  { %1101 = vmatpush1.bf16.msra.mxu0 %v1816_v20  ;;  %1142 = vmatpush1.bf16.msra.mxu1 %v1821_v21  ;;  %v1663_v20 = vld [vmem:[%s2320_s1 + $0xec] ss:$16 sps:$4 sm:$0xff]  }
 0x56c   :  { %1102 = vmatprep.subr.bf16.mxu0 %v1828_v22  ;;  %1143 = vmatprep.subr.bf16.mxu1 %v1835_v23 }
 0x56f   :  { %1103 = vmatpush1.bf16.msra.mxu0 %v1842_v24  ;;  %1144 = vmatpush1.bf16.msra.mxu1 %v1847_v25 }
 0x570   :  { %1104 = vmatprep.subr.bf16.mxu0 %v1854_v26  ;;  %1145 = vmatprep.subr.bf16.mxu1 %v1859_v27 }
 0x573   :  { %1105 = vmatpush1.bf16.msra.mxu0 %v1866_v28  ;;  %1146 = vmatpush1.bf16.msra.mxu1 %v1871_v29 }
 0x574   :  { %1106 = vmatprep.subr.bf16.mxu0 %v1878_v30  ;;  %1147 = vmatprep.subr.bf16.mxu1 %v1883_v31  ;;  %v1453_v31 = vld [vmem:[%s2321_s0 + $0x28] sm:$0xff] }
 0x577   :  { %1107 = vmatpush1.bf16.msra.mxu0 %v1890_v32  ;;  %1148 = vmatpush1.bf16.msra.mxu1 %v1895_v33 }
 0x578   :  { %1238 = vmatprep.subr.bf16.mxu0 %v1662_v19  ;;  %1279 = vmatprep.subr.bf16.mxu1 %v1663_v20 }
 0x61a   :  { %v980_v21 = vpop.f32.mrf.mxu0  ;;  %v1021_v22 = vpop.f32.mrf.mxu1 }
 0x61c   :  { %v982_v23 = vpop.f32.mrf.mxu0  ;;  %v1023_v24 = vpop.f32.mrf.mxu1 }
 0x61d   :  { %v1032_v25 = vcombine.low %v980_v21, %v982_v23  ;;  %v1033_v26 = vcombine.low %v1021_v22, %v1023_v24  ;;  %v1458_v23 = vld [vmem:[%s2321_s0 + $0x30] sm:$0xff] }
 0x61e   :  { %v984_v27 = vpop.f32.mrf.mxu0  ;;  %v1025_v28 = vpop.f32.mrf.mxu1 }
 0x61f   :  { %v1040_v29 = vrot.slane %v1032_v25, %v1937_v43  ;;  %v1047_v30 = vrot.slane %v1033_v26, %v1937_v43 }
 0x620   :  { %v985_v32 = vpop.f32.mrf.mxu0  ;;  %v1026_v33 = vpop.f32.mrf.mxu1 }
 0x621   :  { %v1048_v12 = vcombine.low %v1040_v29, %v1047_v30 }
 0x623   :  { %v1050_v13 = vadd.f32 %v1453_v31, %v1048_v12 }
 0x625   :  { %v1454_v14 = vmul.f32 -1.442695, %v1050_v13  ;;  %v1058_v15 = vrot.slane %v1050_v13, 2  ;;  %v1069_v16 = vrot.slane %v1050_v13, 6  ;;  %v1066_v18 = vrot.slane %v1050_v13, 4 }
 0x627   :  { %1599 = vpow2.f32 %v1454_v14  ;;  %v1455_v0 = vmul.f32 -1.442695, %v1058_v15  ;;  %v1456_v3 = vmul.f32 -1.442695, %v1069_v16 }
 0x629   :  { %1601 = vpow2.f32 %v1455_v0 }
 0x62a   :  { %1603 = vpow2.f32 %v1456_v3 }
 0x634   :  { %v1600_v17 = vpop.eup %1599 }
 0x635   :  { %v1054_v52 = vadd.f32 1.0, %v1600_v17 }
 0x636   :  { %v1602_v53 = vpop.eup %1601 }
 0x637   :  { %1605 = vrcp.f32 %v1054_v52  ;;  %v1063_v54 = vadd.f32 1.0, %v1602_v53  ;;  %v1604_v55 = vpop.eup %1603 }
 0x638   :  { %1607 = vtanh.f32 %v1066_v18  ;;  %v1074_v60 = vadd.f32 1.0, %v1604_v55 }
 0x639   :  { %1609 = vrcp.f32 %v1063_v54 }
 0x63a   :  { %1611 = vrcp.f32 %v1074_v60 }
 0x644   :  { %v1606_v56 = vpop.eup %1605 }
 0x645   :  { %v1608_v57 = vpop.eup %1607 }
 0x646   :  { %v1610_v58 = vpop.eup %1609  ;;  %v1078_v62 = vmul.f32 %v1608_v57, %v1606_v56 }
 0x647   :  { %v1077_v61 = vmul.f32 %v1610_v58, %v942_v59  ;;  %v1612_v2 = vpop.eup %1611 }
 0x649   :  { %v1079_v63 = vadd.f32 %v1078_v62, %v1077_v61 }
 0x64b   :  { %1613 = vtanh.f32 %v1079_v63  ;;  %1083 = vst [vmem:[#allocation3] sm:$0x3] %v1079_v63 }
 0x652   :  { %v1088_v18 = vld [vmem:[#allocation3] sm:$0x3] }
 0x658   :  { %v1614_v34 = vpop.eup %1613 }
 0x659   :  { %v1081_v35 = vmul.f32 %v1614_v34, %v1612_v2 }
 0x65b   :  { %v1084_v36 = vpack.c.bf16 %v1081_v35, %v1081_v35  ;;  %1082 = vst [vmem:[#allocation2] sm:$0x3] %v1081_v35 }
 0x65d   :  { %1457 = vst [vmem:[%s2322_s2 + $0x5] sm:$0x1] %v1084_v36 }
 0x662   :  { %v1087_v37 = vld [vmem:[#allocation2] sm:$0x3] }
 0x663   :  { %v1091_v38 = vpack.c.bf16 %v1087_v37, %v1087_v37 }
 0x665   :  { %1125 = vmatmul.mubr.bf16.vlgmr.msra.gmra.mxu0 %v1091_v38  ;;  %1166 = vmatmul.mubr.bf16.vlgmr.msra.gmra.mxu1 %v1091_v38 }
 0x666   :  { %1239 = vmatpush1.bf16.msra.mxu0 %v2118_v45  ;;  %1280 = vmatpush1.bf16.msra.mxu1 %v2124_v46  ;;  %v1670_v45 = vld [vmem:[%s2320_s1 + $0x48] ss:$16 sps:$4 sm:$0xff]   ;;  %v1671_v46 = vld [vmem:[%s2320_s1 + $0x24] ss:$16 sps:$4 sm:$0xff]  }
 0x667   :  { %1240 = vmatprep.subr.bf16.mxu0 %v2130_v47  ;;  %1281 = vmatprep.subr.bf16.mxu1 %v2136_v48  ;;  %v1672_v47 = vld [vmem:[%s2320_s1 + $0x2c] ss:$16 sps:$4 sm:$0xff]   ;;  %v1673_v48 = vld [vmem:[%s2320_s1 + $0x20] ss:$16 sps:$4 sm:$0xff]  }
 0x668   :  { %1270 = vmatprep.mubr.bf16.mxu0 %v1679_v1  ;;  %1311 = vmatprep.mubr.bf16.mxu1 %v1679_v1  ;;  %v1664_v1 = vld [vmem:[%s2320_s1 + $0x6c] ss:$16 sps:$4 sm:$0xff]  }
 0x66a   :  { %1241 = vmatpush1.bf16.msra.mxu0 %v2144_v49  ;;  %1282 = vmatpush1.bf16.msra.mxu1 %v2150_v50  ;;  %v1674_v49 = vld [vmem:[%s2320_s1 + $0x28] ss:$16 sps:$4 sm:$0xff]   ;;  %v1675_v50 = vld [vmem:[%s2320_s1 + $0x4] ss:$16 sps:$4 sm:$0xff]  }
 0x66b   :  { %1242 = vmatprep.subr.bf16.mxu0 %v2156_v51  ;;  %1283 = vmatprep.subr.bf16.mxu1 %v2162_v4  ;;  %v1676_v51 = vld [vmem:[%s2320_s1 + $0xc] ss:$16 sps:$4 sm:$0xff]   ;;  %v1677_v4 = vld [vmem:[%s2320_s1] ss:$16 sps:$4 sm:$0xff]  }
 0x66e   :  { %1243 = vmatpush1.bf16.msra.mxu0 %v2168_v5  ;;  %1284 = vmatpush1.bf16.msra.mxu1 %v2174_v6  ;;  %v1678_v5 = vld [vmem:[%s2320_s1 + $0x8] ss:$16 sps:$4 sm:$0xff]  }
 0x66f   :  { %1244 = vmatprep.subr.bf16.mxu0 %v2180_v7  ;;  %1285 = vmatprep.subr.bf16.mxu1 %v2186_v8 }
 0x672   :  { %1245 = vmatpush1.bf16.msra.mxu0 %v2192_v9  ;;  %1286 = vmatpush1.bf16.msra.mxu1 %v2198_v10 }
 0x673   :  { %1246 = vmatprep.subr.bf16.mxu0 %v2204_v11  ;;  %1287 = vmatprep.subr.bf16.mxu1 %v1664_v1 }
 0x676   :  { %1247 = vmatpush1.bf16.msra.mxu0 %v1665_v39  ;;  %1288 = vmatpush1.bf16.msra.mxu1 %v1666_v40  ;;  %v1463_v40 = vld [vmem:[%s2321_s0 + $0x38] sm:$0xff] }
 0x677   :  { %1248 = vmatprep.subr.bf16.mxu0 %v1667_v41  ;;  %1289 = vmatprep.subr.bf16.mxu1 %v1668_v42 }
 0x67a   :  { %1249 = vmatpush1.bf16.msra.mxu0 %v1669_v44  ;;  %1290 = vmatpush1.bf16.msra.mxu1 %v1670_v45 }
 0x67b   :  { %1250 = vmatprep.subr.bf16.mxu0 %v1671_v46  ;;  %1291 = vmatprep.subr.bf16.mxu1 %v1672_v47 }
 0x67e   :  { %1251 = vmatpush1.bf16.msra.mxu0 %v1673_v48  ;;  %1292 = vmatpush1.bf16.msra.mxu1 %v1674_v49 }
 0x67f   :  { %1252 = vmatprep.subr.bf16.mxu0 %v1675_v50  ;;  %1293 = vmatprep.subr.bf16.mxu1 %v1676_v51 }
 0x682   :  { %1253 = vmatpush1.bf16.msra.mxu0 %v1677_v4  ;;  %1294 = vmatpush1.bf16.msra.mxu1 %v1678_v5 }
 0x725   :  { %v1126_v6 = vpop.f32.mrf.mxu0  ;;  %v1167_v7 = vpop.f32.mrf.mxu1 }
 0x727   :  { %v1128_v8 = vpop.f32.mrf.mxu0  ;;  %v1169_v9 = vpop.f32.mrf.mxu1 }
 0x728   :  { %v1178_v10 = vcombine.low %v1126_v6, %v1128_v8  ;;  %v1179_v11 = vcombine.low %v1167_v7, %v1169_v9 }
 0x729   :  { %v1130_v19 = vpop.f32.mrf.mxu0  ;;  %v1171_v20 = vpop.f32.mrf.mxu1 }
 0x72a   :  { %v1186_v21 = vrot.slane %v1178_v10, %v1937_v43  ;;  %v1193_v22 = vrot.slane %v1179_v11, %v1937_v43 }
 0x72b   :  { %v1131_v24 = vpop.f32.mrf.mxu0  ;;  %v1172_v25 = vpop.f32.mrf.mxu1 }
 0x72c   :  { %v1194_v26 = vcombine.low %v1186_v21, %v1193_v22 }
 0x72e   :  { %v1196_v27 = vadd.f32 %v1458_v23, %v1194_v26 }
 0x730   :  { %v1459_v28 = vmul.f32 -1.442695, %v1196_v27  ;;  %v1204_v29 = vrot.slane %v1196_v27, 2  ;;  %v1215_v31 = vrot.slane %v1196_v27, 6  ;;  %v1212_v12 = vrot.slane %v1196_v27, 4 }
 0x732   :  { %1615 = vpow2.f32 %v1459_v28  ;;  %v1460_v30 = vmul.f32 -1.442695, %v1204_v29  ;;  %v1461_v32 = vmul.f32 -1.442695, %v1215_v31 }
 0x734   :  { %1617 = vpow2.f32 %v1460_v30 }
 0x735   :  { %1619 = vpow2.f32 %v1461_v32 }
 0x73f   :  { %v1616_v33 = vpop.eup %1615 }
 0x740   :  { %v1200_v13 = vadd.f32 1.0, %v1616_v33 }
 0x741   :  { %v1618_v14 = vpop.eup %1617 }
 0x742   :  { %1621 = vrcp.f32 %v1200_v13  ;;  %v1209_v15 = vadd.f32 1.0, %v1618_v14  ;;  %v1620_v0 = vpop.eup %1619 }
 0x743   :  { %1623 = vtanh.f32 %v1212_v12  ;;  %v1220_v52 = vadd.f32 1.0, %v1620_v0 }
 0x744   :  { %1625 = vrcp.f32 %v1209_v15 }
 0x745   :  { %1627 = vrcp.f32 %v1220_v52 }
 0x74f   :  { %v1622_v16 = vpop.eup %1621 }
 0x750   :  { %v1624_v3 = vpop.eup %1623 }
 0x751   :  { %v1626_v17 = vpop.eup %1625  ;;  %v1224_v54 = vmul.f32 %v1624_v3, %v1622_v16 }
 0x752   :  { %v1223_v53 = vmul.f32 %v1626_v17, %v1088_v18  ;;  %v1628_v56 = vpop.eup %1627 }
 0x754   :  { %v1225_v55 = vadd.f32 %v1224_v54, %v1223_v53 }
 0x756   :  { %1629 = vtanh.f32 %v1225_v55  ;;  %1229 = vst [vmem:[#allocation3] sm:$0x3] %v1225_v55 }
 0x75d   :  { %v1234_v11 = vld [vmem:[#allocation3] sm:$0x3] }
 0x763   :  { %v1630_v57 = vpop.eup %1629 }
 0x764   :  { %v1227_v58 = vmul.f32 %v1630_v57, %v1628_v56 }
 0x766   :  { %v1230_v59 = vpack.c.bf16 %v1227_v58, %v1227_v58  ;;  %1228 = vst [vmem:[#allocation2] sm:$0x3] %v1227_v58 }
 0x768   :  { %1462 = vst [vmem:[%s2322_s2 + $0x6] sm:$0x1] %v1230_v59 }
 0x76d   :  { %v1233_v60 = vld [vmem:[#allocation2] sm:$0x3] }
 0x76e   :  { %v1237_v61 = vpack.c.bf16 %v1233_v60, %v1233_v60 }
 0x770   :  { %1271 = vmatmul.mubr.bf16.vlgmr.msra.gmra.mxu0 %v1237_v61  ;;  %1312 = vmatmul.mubr.bf16.vlgmr.msra.gmra.mxu1 %v1237_v61 }
 0x830   :  { %v1272_v62 = vpop.f32.mrf.mxu0  ;;  %v1313_v63 = vpop.f32.mrf.mxu1 }
 0x832   :  { %v1274_v2 = vpop.f32.mrf.mxu0  ;;  %v1315_v34 = vpop.f32.mrf.mxu1 }
 0x833   :  { %v1324_v35 = vcombine.low %v1272_v62, %v1274_v2  ;;  %v1325_v36 = vcombine.low %v1313_v63, %v1315_v34 }
 0x834   :  { %v1276_v37 = vpop.f32.mrf.mxu0  ;;  %v1317_v38 = vpop.f32.mrf.mxu1 }
 0x835   :  { %v1332_v1 = vrot.slane %v1324_v35, %v1937_v43  ;;  %v1339_v39 = vrot.slane %v1325_v36, %v1937_v43 }
 0x836   :  { %v1277_v41 = vpop.f32.mrf.mxu0  ;;  %v1318_v42 = vpop.f32.mrf.mxu1 }
 0x837   :  { %v1340_v44 = vcombine.low %v1332_v1, %v1339_v39 }
 0x839   :  { %v1342_v45 = vadd.f32 %v1463_v40, %v1340_v44 }
 0x83b   :  { %v1464_v46 = vmul.f32 -1.442695, %v1342_v45  ;;  %v1350_v47 = vrot.slane %v1342_v45, 2  ;;  %v1361_v49 = vrot.slane %v1342_v45, 6  ;;  %v1358_v4 = vrot.slane %v1342_v45, 4 }
 0x83d   :  { %1631 = vpow2.f32 %v1464_v46  ;;  %v1465_v48 = vmul.f32 -1.442695, %v1350_v47  ;;  %v1466_v50 = vmul.f32 -1.442695, %v1361_v49 }
 0x83f   :  { %1633 = vpow2.f32 %v1465_v48 }
 0x840   :  { %1635 = vpow2.f32 %v1466_v50 }
 0x84a   :  { %v1632_v51 = vpop.eup %1631 }
 0x84b   :  { %v1346_v5 = vadd.f32 1.0, %v1632_v51 }
 0x84c   :  { %v1634_v6 = vpop.eup %1633 }
 0x84d   :  { %1637 = vrcp.f32 %v1346_v5  ;;  %v1355_v43 = vadd.f32 1.0, %v1634_v6  ;;  %v1636_v7 = vpop.eup %1635 }
 0x84e   :  { %1639 = vtanh.f32 %v1358_v4  ;;  %v1366_v19 = vadd.f32 1.0, %v1636_v7 }
 0x84f   :  { %1641 = vrcp.f32 %v1355_v43 }
 0x850   :  { %1643 = vrcp.f32 %v1366_v19 }
 0x85a   :  { %v1638_v8 = vpop.eup %1637 }
 0x85b   :  { %v1640_v9 = vpop.eup %1639 }
 0x85c   :  { %v1642_v10 = vpop.eup %1641  ;;  %v1370_v21 = vmul.f32 %v1640_v9, %v1638_v8 }
 0x85d   :  { %v1369_v20 = vmul.f32 %v1642_v10, %v1234_v11  ;;  %v1644_v24 = vpop.eup %1643 }
 0x85f   :  { %v1371_v22 = vadd.f32 %v1370_v21, %v1369_v20 }
 0x861   :  { %1645 = vtanh.f32 %v1371_v22  ;;  %1375 = vst [vmem:[#allocation3] sm:$0x3] %v1371_v22 }
 0x868   :  { %v1384_v23 = vld [vmem:[#allocation3] sm:$0x3] }
 0x869   :  { %1385 = vst [vmem:[%s2323_s4] sm:$0x3] %v1384_v23 }
 0x86e   :  { %v1646_v25 = vpop.eup %1645 }
 0x86f   :  { %v1373_v26 = vmul.f32 %v1646_v25, %v1644_v24 }
 0x871   :  { %1374 = vst [vmem:[#allocation2] sm:$0x3] %v1373_v26  ;;  %v1376_v27 = vpack.c.bf16 %v1373_v26, %v1373_v26 }
 0x873   :  { %1467 = vst [vmem:[%s2322_s2 + $0x7] sm:$0x1] %v1376_v27 }
 0x878   :  { %v1382_v28 = vld [vmem:[#allocation2] sm:$0x3] }
 0x879   :  { %1383 = vst [vmem:[%s2324_s3] sm:$0x3] %v1382_v28 }

</bundles_post_ra>
